<compile_context>
chip_gen: v5e
topology: v5e:2x2
jax: 0.10.0
libtpu: 0.0.40
codegen_flags: <defaults>
</compile_context>

<pallas_src>
import functools

import jax
import jax.numpy as jnp
from jax.experimental import pallas as pl
from jax.experimental.pallas import tpu as pltpu


# Gate slot order inside the kernel: [i, f, o, g]  (PyTorch order is [i, f, g, o])
GATE_PERM = (0, 1, 3, 2)


def lstm_kernel(xp_ref, whh_ref, wfc_ref, bfc_ref, out_ref, *, T, Bp, Hp):
    bf16 = jnp.bfloat16

    # State carried in vregs ((Bp, Hp) = one f32 vreg each at Bp=8, Hp=128).
    h = jnp.zeros((Bp, Hp), jnp.float32)
    c = jnp.zeros((Bp, Hp), jnp.float32)

    # T is a tiny static constant -> fully unrolled straight-line recurrence.
    for t in range(T):
        # xp already holds x_t @ W_ih^T + (b_ih + b_hh) in gate-major layout.
        gates = xp_ref[t * Bp:(t + 1) * Bp, :] + jnp.dot(
            h.astype(bf16), whh_ref[...],
            preferred_element_type=jnp.float32)                 # (Bp, 4Hp)

        # Slots [i, f, o] are contiguous -> one sigmoid over (Bp, 3*Hp),
        # expressed as a single tanh EUP op: sigmoid(x) = 0.5*tanh(0.5x)+0.5.
        sig = 0.5 * jnp.tanh(0.5 * gates[:, :3 * Hp]) + 0.5
        i_g = sig[:, 0 * Hp:1 * Hp]
        f_g = sig[:, 1 * Hp:2 * Hp]
        o_g = sig[:, 2 * Hp:3 * Hp]
        g_g = jnp.tanh(gates[:, 3 * Hp:4 * Hp])

        c = f_g * c + i_g * g_g
        h = o_g * jnp.tanh(c)

    # Fused final Linear on the last hidden state (lane-padded output -> one
    # unmasked store).
    out_ref[...] = (
        jnp.dot(h.astype(bf16), wfc_ref[...],
                preferred_element_type=jnp.float32)
        + bfc_ref[...]
    ).astype(out_ref.dtype)


def _pad_gate_weight(w, H, Hp, in_dim, in_dim_pad, dtype):
    """PyTorch (4H, in_dim) gate-stacked weight -> (in_dim_pad, 4*Hp), each gate
    transposed into its own Hp-wide 128-lane-aligned slot, slot order GATE_PERM."""
    out = jnp.zeros((in_dim_pad, 4 * Hp), dtype)
    for slot, g in enumerate(GATE_PERM):
        blk = w[g * H:(g + 1) * H, :].astype(jnp.float32).T     # (in_dim, H)
        out = out.at[:in_dim, slot * Hp:slot * Hp + H].set(blk.astype(dtype))
    return out


def my_lstm_forward(x, w_ih, w_hh, b_ih, b_hh, w_fc, b_fc):
    """x: (B, T, input_size) float32 (batch_first, like the PyTorch module)."""
    B, T, I = x.shape
    H = w_hh.shape[1]                      # w_hh: (4H, H)
    O = w_fc.shape[0]                      # w_fc: (O, H)

    f32 = jnp.float32
    bf16 = jnp.bfloat16
    Bp = max(8, -(-B // 8) * 8)            # pad batch to sublane count
    Hp = -(-H // 128) * 128                # per-gate 128-lane-aligned slot
    Op = -(-O // 128) * 128                # lane-padded FC output

    # ---- wrapper-side (plain JAX) layout prep ------------------------------
    # Input projection + combined bias hoisted fully out of the kernel
    # (degenerate K=4 matmul; negligible extra input DMA at these sizes).
    xp = (jnp.einsum('bti,gi->btg', x.astype(f32), w_ih.astype(f32))
          + (b_ih + b_hh).astype(f32))                           # (B, T, 4H)
    xp = jnp.transpose(xp, (1, 0, 2))                            # (T, B, 4H)
    xp = jnp.pad(xp, ((0, 0), (0, Bp - B), (0, 0)))              # (T, Bp, 4H)
    xp = xp.reshape(T, Bp, 4, H)
    xp = xp[:, :, jnp.array(GATE_PERM), :]                       # [i,f,o,g] order
    xp = jnp.pad(xp, ((0, 0), (0, 0), (0, 0), (0, Hp - H)))      # pad gate slots
    xp2 = xp.reshape(T * Bp, 4 * Hp)                             # (T*Bp, 4Hp) f32

    whh_p = _pad_gate_weight(w_hh, H, Hp, H, Hp, bf16)           # (Hp, 4Hp) bf16
    wfc_p = jnp.zeros((Hp, Op), bf16).at[:H, :O].set(
        w_fc.astype(f32).T.astype(bf16))                         # (Hp, Op) bf16
    bfc_p = jnp.zeros((1, Op), f32).at[0, :O].set(b_fc.astype(f32))

    kernel = functools.partial(lstm_kernel, T=T, Bp=Bp, Hp=Hp)

    out_p = pl.pallas_call(
        kernel,
        out_shape=jax.ShapeDtypeStruct((Bp, Op), f32),
        grid_spec=pltpu.PrefetchScalarGridSpec(
            num_scalar_prefetch=0,
            grid=(1,),                                   # single invocation
            in_specs=[
                pl.BlockSpec((T * Bp, 4 * Hp), lambda i: (0, 0)),  # precomputed x-proj
                pl.BlockSpec((Hp, 4 * Hp), lambda i: (0, 0)),      # W_hh^T (bf16)
                pl.BlockSpec((Hp, Op), lambda i: (0, 0)),          # W_fc^T (bf16)
                pl.BlockSpec((1, Op), lambda i: (0, 0)),           # fc bias
            ],
            out_specs=pl.BlockSpec((Bp, Op), lambda i: (0, 0)),
        ),
        compiler_params=pltpu.CompilerParams(
            dimension_semantics=("arbitrary",),
        ),
    )(xp2, whh_p, wfc_p, bfc_p)

    return out_p[:B, :O]


def my_lstm_reference(x, w_ih, w_hh, b_ih, b_hh, w_fc, b_fc):
    """Pure-JAX reference matching torch.nn.LSTM(batch_first=True) + Linear."""
    B, T, I = x.shape
    H = w_hh.shape[1]

    def step(carry, x_t):
        h, c = carry
        gates = x_t @ w_ih.T + b_ih + h @ w_hh.T + b_hh
        i_g = jax.nn.sigmoid(gates[:, 0 * H:1 * H])
        f_g = jax.nn.sigmoid(gates[:, 1 * H:2 * H])
        g_g = jnp.tanh(gates[:, 2 * H:3 * H])
        o_g = jax.nn.sigmoid(gates[:, 3 * H:4 * H])
        c = f_g * c + i_g * g_g
        h = o_g * jnp.tanh(c)
        return (h, c), h

    h0 = jnp.zeros((B, H), jnp.float32)
    c0 = jnp.zeros((B, H), jnp.float32)
    (h_T, _), _ = jax.lax.scan(step, (h0, c0), jnp.transpose(x, (1, 0, 2)))
    return h_T @ w_fc.T + b_fc


if __name__ == "__main__":
    # Small shapes implied by the module: batch=2, seq=8, input=4, hidden=32, out=8
    B, T, I, H, O = 2, 8, 4, 32, 8

    key = jax.random.PRNGKey(0)
    ks = jax.random.split(key, 7)
    bound = 1.0 / jnp.sqrt(H)

    x = jax.random.normal(ks[0], (B, T, I), dtype=jnp.float32)
    w_ih = jax.random.uniform(ks[1], (4 * H, I), minval=-bound, maxval=bound)
    w_hh = jax.random.uniform(ks[2], (4 * H, H), minval=-bound, maxval=bound)
    b_ih = jax.random.uniform(ks[3], (4 * H,), minval=-bound, maxval=bound)
    b_hh = jax.random.uniform(ks[4], (4 * H,), minval=-bound, maxval=bound)
    w_fc = jax.random.uniform(ks[5], (O, H), minval=-bound, maxval=bound)
    b_fc = jax.random.uniform(ks[6], (O,), minval=-bound, maxval=bound)

    out = my_lstm_forward(x, w_ih, w_hh, b_ih, b_hh, w_fc, b_fc)
    out = jax.block_until_ready(out)

    ref = my_lstm_reference(x, w_ih, w_hh, b_ih, b_hh, w_fc, b_fc)
    assert out.shape == (B, O)
    # Tolerance relaxed for bf16 recurrent/FC matmul weights (f32 accumulation).
    assert jnp.allclose(out, ref, atol=2e-2, rtol=2e-2), "mismatch vs JAX reference"

    print("KERNEL_OK")
</pallas_src>

<mosaic_0001>
module attributes {stable_mosaic.version = 11 : i64} {
  func.func @lstm_kernel(%arg0: i32, %arg1: memref<64x512xf32, #tpu.memory_space<vmem>>, %arg2: memref<128x512xbf16, #tpu.memory_space<vmem>>, %arg3: memref<128x128xbf16, #tpu.memory_space<vmem>>, %arg4: memref<1x128xf32, #tpu.memory_space<vmem>>, %arg5: memref<8x128xf32, #tpu.memory_space<vmem>>) attributes {dimension_semantics = [#tpu.dimension_semantics<arbitrary>], iteration_bounds = array<i64: 1>, scalar_prefetch = 0 : i64, scratch_operands = 0 : i64, tpu.core_type = #tpu.core_type<tc>, window_params = [{pipeline_mode = #tpu.pipeline_mode<synchronous>, transform_indices = @transform_0, window_bounds = array<i64: 64, 512>}, {pipeline_mode = #tpu.pipeline_mode<synchronous>, transform_indices = @transform_1, window_bounds = array<i64: 128, 512>}, {pipeline_mode = #tpu.pipeline_mode<synchronous>, transform_indices = @transform_2, window_bounds = array<i64: 128, 128>}, {pipeline_mode = #tpu.pipeline_mode<synchronous>, transform_indices = @transform_3, window_bounds = array<i64: 1, 128>}, {pipeline_mode = #tpu.pipeline_mode<synchronous>, transform_indices = @transform_4, window_bounds = array<i64: 8, 128>}]} {
    %cst = arith.constant 0.000000e+00 : f32
    %0 = vector.broadcast %cst : f32 to vector<8x128xf32>
    %cst_0 = arith.constant 0.000000e+00 : f32
    %1 = vector.broadcast %cst_0 : f32 to vector<8x128xf32>
    %c0 = arith.constant 0 : index
    %c0_1 = arith.constant 0 : index
    %2 = vector.load %arg1[%c0, %c0_1] : memref<64x512xf32, #tpu.memory_space<vmem>>, vector<8x512xf32>
    %3 = arith.truncf %0 : vector<8x128xf32> to vector<8x128xbf16>
    %c0_2 = arith.constant 0 : index
    %c0_3 = arith.constant 0 : index
    %4 = vector.load %arg2[%c0_2, %c0_3] : memref<128x512xbf16, #tpu.memory_space<vmem>>, vector<128x512xbf16>
    %cst_4 = arith.constant dense<0.000000e+00> : vector<8x512xf32>
    %5 = tpu.matmul %3, %4, %cst_4 {dimension_numbers = #tpu.dot_dimension_numbers<[1], [0], [0], [1], [0, 0, 1, 1], [], []>} : vector<8x128xbf16>, vector<128x512xbf16>, vector<8x512xf32> -> vector<8x512xf32>
    %6 = arith.addf %2, %5 : vector<8x512xf32>
    %7 = vector.extract_strided_slice %6 {offsets = [0, 0], sizes = [8, 384], strides = [1, 1]} : vector<8x512xf32> to vector<8x384xf32>
    %cst_5 = arith.constant 5.000000e-01 : f32
    %8 = vector.broadcast %cst_5 : f32 to vector<8x384xf32>
    %9 = arith.mulf %8, %7 : vector<8x384xf32>
    %10 = math.tanh %9 : vector<8x384xf32>
    %cst_6 = arith.constant 5.000000e-01 : f32
    %11 = vector.broadcast %cst_6 : f32 to vector<8x384xf32>
    %12 = arith.mulf %11, %10 : vector<8x384xf32>
    %cst_7 = arith.constant 5.000000e-01 : f32
    %13 = vector.broadcast %cst_7 : f32 to vector<8x384xf32>
    %14 = arith.addf %12, %13 : vector<8x384xf32>
    %15 = vector.extract_strided_slice %14 {offsets = [0, 0], sizes = [8, 128], strides = [1, 1]} : vector<8x384xf32> to vector<8x128xf32>
    %16 = vector.extract_strided_slice %14 {offsets = [0, 128], sizes = [8, 128], strides = [1, 1]} : vector<8x384xf32> to vector<8x128xf32>
    %17 = vector.extract_strided_slice %14 {offsets = [0, 256], sizes = [8, 128], strides = [1, 1]} : vector<8x384xf32> to vector<8x128xf32>
    %18 = vector.extract_strided_slice %6 {offsets = [0, 384], sizes = [8, 128], strides = [1, 1]} : vector<8x512xf32> to vector<8x128xf32>
    %19 = math.tanh %18 : vector<8x128xf32>
    %20 = arith.mulf %16, %1 : vector<8x128xf32>
    %21 = arith.mulf %15, %19 : vector<8x128xf32>
    %22 = arith.addf %20, %21 : vector<8x128xf32>
    %23 = math.tanh %22 : vector<8x128xf32>
    %24 = arith.mulf %17, %23 : vector<8x128xf32>
    %c8 = arith.constant 8 : index
    %c0_8 = arith.constant 0 : index
    %25 = vector.load %arg1[%c8, %c0_8] : memref<64x512xf32, #tpu.memory_space<vmem>>, vector<8x512xf32>
    %26 = arith.truncf %24 : vector<8x128xf32> to vector<8x128xbf16>
    %c0_9 = arith.constant 0 : index
    %c0_10 = arith.constant 0 : index
    %27 = vector.load %arg2[%c0_9, %c0_10] : memref<128x512xbf16, #tpu.memory_space<vmem>>, vector<128x512xbf16>
    %cst_11 = arith.constant dense<0.000000e+00> : vector<8x512xf32>
    %28 = tpu.matmul %26, %27, %cst_11 {dimension_numbers = #tpu.dot_dimension_numbers<[1], [0], [0], [1], [0, 0, 1, 1], [], []>} : vector<8x128xbf16>, vector<128x512xbf16>, vector<8x512xf32> -> vector<8x512xf32>
    %29 = arith.addf %25, %28 : vector<8x512xf32>
    %30 = vector.extract_strided_slice %29 {offsets = [0, 0], sizes = [8, 384], strides = [1, 1]} : vector<8x512xf32> to vector<8x384xf32>
    %cst_12 = arith.constant 5.000000e-01 : f32
    %31 = vector.broadcast %cst_12 : f32 to vector<8x384xf32>
    %32 = arith.mulf %31, %30 : vector<8x384xf32>
    %33 = math.tanh %32 : vector<8x384xf32>
    %cst_13 = arith.constant 5.000000e-01 : f32
    %34 = vector.broadcast %cst_13 : f32 to vector<8x384xf32>
    %35 = arith.mulf %34, %33 : vector<8x384xf32>
    %cst_14 = arith.constant 5.000000e-01 : f32
    %36 = vector.broadcast %cst_14 : f32 to vector<8x384xf32>
    %37 = arith.addf %35, %36 : vector<8x384xf32>
    %38 = vector.extract_strided_slice %37 {offsets = [0, 0], sizes = [8, 128], strides = [1, 1]} : vector<8x384xf32> to vector<8x128xf32>
    %39 = vector.extract_strided_slice %37 {offsets = [0, 128], sizes = [8, 128], strides = [1, 1]} : vector<8x384xf32> to vector<8x128xf32>
    %40 = vector.extract_strided_slice %37 {offsets = [0, 256], sizes = [8, 128], strides = [1, 1]} : vector<8x384xf32> to vector<8x128xf32>
    %41 = vector.extract_strided_slice %29 {offsets = [0, 384], sizes = [8, 128], strides = [1, 1]} : vector<8x512xf32> to vector<8x128xf32>
    %42 = math.tanh %41 : vector<8x128xf32>
    %43 = arith.mulf %39, %22 : vector<8x128xf32>
    %44 = arith.mulf %38, %42 : vector<8x128xf32>
    %45 = arith.addf %43, %44 : vector<8x128xf32>
    %46 = math.tanh %45 : vector<8x128xf32>
    %47 = arith.mulf %40, %46 : vector<8x128xf32>
    %c16 = arith.constant 16 : index
    %c0_15 = arith.constant 0 : index
    %48 = vector.load %arg1[%c16, %c0_15] : memref<64x512xf32, #tpu.memory_space<vmem>>, vector<8x512xf32>
    %49 = arith.truncf %47 : vector<8x128xf32> to vector<8x128xbf16>
    %c0_16 = arith.constant 0 : index
    %c0_17 = arith.constant 0 : index
    %50 = vector.load %arg2[%c0_16, %c0_17] : memref<128x512xbf16, #tpu.memory_space<vmem>>, vector<128x512xbf16>
    %cst_18 = arith.constant dense<0.000000e+00> : vector<8x512xf32>
    %51 = tpu.matmul %49, %50, %cst_18 {dimension_numbers = #tpu.dot_dimension_numbers<[1], [0], [0], [1], [0, 0, 1, 1], [], []>} : vector<8x128xbf16>, vector<128x512xbf16>, vector<8x512xf32> -> vector<8x512xf32>
    %52 = arith.addf %48, %51 : vector<8x512xf32>
    %53 = vector.extract_strided_slice %52 {offsets = [0, 0], sizes = [8, 384], strides = [1, 1]} : vector<8x512xf32> to vector<8x384xf32>
    %cst_19 = arith.constant 5.000000e-01 : f32
    %54 = vector.broadcast %cst_19 : f32 to vector<8x384xf32>
    %55 = arith.mulf %54, %53 : vector<8x384xf32>
    %56 = math.tanh %55 : vector<8x384xf32>
    %cst_20 = arith.constant 5.000000e-01 : f32
    %57 = vector.broadcast %cst_20 : f32 to vector<8x384xf32>
    %58 = arith.mulf %57, %56 : vector<8x384xf32>
    %cst_21 = arith.constant 5.000000e-01 : f32
    %59 = vector.broadcast %cst_21 : f32 to vector<8x384xf32>
    %60 = arith.addf %58, %59 : vector<8x384xf32>
    %61 = vector.extract_strided_slice %60 {offsets = [0, 0], sizes = [8, 128], strides = [1, 1]} : vector<8x384xf32> to vector<8x128xf32>
    %62 = vector.extract_strided_slice %60 {offsets = [0, 128], sizes = [8, 128], strides = [1, 1]} : vector<8x384xf32> to vector<8x128xf32>
    %63 = vector.extract_strided_slice %60 {offsets = [0, 256], sizes = [8, 128], strides = [1, 1]} : vector<8x384xf32> to vector<8x128xf32>
    %64 = vector.extract_strided_slice %52 {offsets = [0, 384], sizes = [8, 128], strides = [1, 1]} : vector<8x512xf32> to vector<8x128xf32>
    %65 = math.tanh %64 : vector<8x128xf32>
    %66 = arith.mulf %62, %45 : vector<8x128xf32>
    %67 = arith.mulf %61, %65 : vector<8x128xf32>
    %68 = arith.addf %66, %67 : vector<8x128xf32>
    %69 = math.tanh %68 : vector<8x128xf32>
    %70 = arith.mulf %63, %69 : vector<8x128xf32>
    %c24 = arith.constant 24 : index
    %c0_22 = arith.constant 0 : index
    %71 = vector.load %arg1[%c24, %c0_22] : memref<64x512xf32, #tpu.memory_space<vmem>>, vector<8x512xf32>
    %72 = arith.truncf %70 : vector<8x128xf32> to vector<8x128xbf16>
    %c0_23 = arith.constant 0 : index
    %c0_24 = arith.constant 0 : index
    %73 = vector.load %arg2[%c0_23, %c0_24] : memref<128x512xbf16, #tpu.memory_space<vmem>>, vector<128x512xbf16>
    %cst_25 = arith.constant dense<0.000000e+00> : vector<8x512xf32>
    %74 = tpu.matmul %72, %73, %cst_25 {dimension_numbers = #tpu.dot_dimension_numbers<[1], [0], [0], [1], [0, 0, 1, 1], [], []>} : vector<8x128xbf16>, vector<128x512xbf16>, vector<8x512xf32> -> vector<8x512xf32>
    %75 = arith.addf %71, %74 : vector<8x512xf32>
    %76 = vector.extract_strided_slice %75 {offsets = [0, 0], sizes = [8, 384], strides = [1, 1]} : vector<8x512xf32> to vector<8x384xf32>
    %cst_26 = arith.constant 5.000000e-01 : f32
    %77 = vector.broadcast %cst_26 : f32 to vector<8x384xf32>
    %78 = arith.mulf %77, %76 : vector<8x384xf32>
    %79 = math.tanh %78 : vector<8x384xf32>
    %cst_27 = arith.constant 5.000000e-01 : f32
    %80 = vector.broadcast %cst_27 : f32 to vector<8x384xf32>
    %81 = arith.mulf %80, %79 : vector<8x384xf32>
    %cst_28 = arith.constant 5.000000e-01 : f32
    %82 = vector.broadcast %cst_28 : f32 to vector<8x384xf32>
    %83 = arith.addf %81, %82 : vector<8x384xf32>
    %84 = vector.extract_strided_slice %83 {offsets = [0, 0], sizes = [8, 128], strides = [1, 1]} : vector<8x384xf32> to vector<8x128xf32>
    %85 = vector.extract_strided_slice %83 {offsets = [0, 128], sizes = [8, 128], strides = [1, 1]} : vector<8x384xf32> to vector<8x128xf32>
    %86 = vector.extract_strided_slice %83 {offsets = [0, 256], sizes = [8, 128], strides = [1, 1]} : vector<8x384xf32> to vector<8x128xf32>
    %87 = vector.extract_strided_slice %75 {offsets = [0, 384], sizes = [8, 128], strides = [1, 1]} : vector<8x512xf32> to vector<8x128xf32>
    %88 = math.tanh %87 : vector<8x128xf32>
    %89 = arith.mulf %85, %68 : vector<8x128xf32>
    %90 = arith.mulf %84, %88 : vector<8x128xf32>
    %91 = arith.addf %89, %90 : vector<8x128xf32>
    %92 = math.tanh %91 : vector<8x128xf32>
    %93 = arith.mulf %86, %92 : vector<8x128xf32>
    %c32 = arith.constant 32 : index
    %c0_29 = arith.constant 0 : index
    %94 = vector.load %arg1[%c32, %c0_29] : memref<64x512xf32, #tpu.memory_space<vmem>>, vector<8x512xf32>
    %95 = arith.truncf %93 : vector<8x128xf32> to vector<8x128xbf16>
    %c0_30 = arith.constant 0 : index
    %c0_31 = arith.constant 0 : index
    %96 = vector.load %arg2[%c0_30, %c0_31] : memref<128x512xbf16, #tpu.memory_space<vmem>>, vector<128x512xbf16>
    %cst_32 = arith.constant dense<0.000000e+00> : vector<8x512xf32>
    %97 = tpu.matmul %95, %96, %cst_32 {dimension_numbers = #tpu.dot_dimension_numbers<[1], [0], [0], [1], [0, 0, 1, 1], [], []>} : vector<8x128xbf16>, vector<128x512xbf16>, vector<8x512xf32> -> vector<8x512xf32>
    %98 = arith.addf %94, %97 : vector<8x512xf32>
    %99 = vector.extract_strided_slice %98 {offsets = [0, 0], sizes = [8, 384], strides = [1, 1]} : vector<8x512xf32> to vector<8x384xf32>
    %cst_33 = arith.constant 5.000000e-01 : f32
    %100 = vector.broadcast %cst_33 : f32 to vector<8x384xf32>
    %101 = arith.mulf %100, %99 : vector<8x384xf32>
    %102 = math.tanh %101 : vector<8x384xf32>
    %cst_34 = arith.constant 5.000000e-01 : f32
    %103 = vector.broadcast %cst_34 : f32 to vector<8x384xf32>
    %104 = arith.mulf %103, %102 : vector<8x384xf32>
    %cst_35 = arith.constant 5.000000e-01 : f32
    %105 = vector.broadcast %cst_35 : f32 to vector<8x384xf32>
    %106 = arith.addf %104, %105 : vector<8x384xf32>
    %107 = vector.extract_strided_slice %106 {offsets = [0, 0], sizes = [8, 128], strides = [1, 1]} : vector<8x384xf32> to vector<8x128xf32>
    %108 = vector.extract_strided_slice %106 {offsets = [0, 128], sizes = [8, 128], strides = [1, 1]} : vector<8x384xf32> to vector<8x128xf32>
    %109 = vector.extract_strided_slice %106 {offsets = [0, 256], sizes = [8, 128], strides = [1, 1]} : vector<8x384xf32> to vector<8x128xf32>
    %110 = vector.extract_strided_slice %98 {offsets = [0, 384], sizes = [8, 128], strides = [1, 1]} : vector<8x512xf32> to vector<8x128xf32>
    %111 = math.tanh %110 : vector<8x128xf32>
    %112 = arith.mulf %108, %91 : vector<8x128xf32>
    %113 = arith.mulf %107, %111 : vector<8x128xf32>
    %114 = arith.addf %112, %113 : vector<8x128xf32>
    %115 = math.tanh %114 : vector<8x128xf32>
    %116 = arith.mulf %109, %115 : vector<8x128xf32>
    %c40 = arith.constant 40 : index
    %c0_36 = arith.constant 0 : index
    %117 = vector.load %arg1[%c40, %c0_36] : memref<64x512xf32, #tpu.memory_space<vmem>>, vector<8x512xf32>
    %118 = arith.truncf %116 : vector<8x128xf32> to vector<8x128xbf16>
    %c0_37 = arith.constant 0 : index
    %c0_38 = arith.constant 0 : index
    %119 = vector.load %arg2[%c0_37, %c0_38] : memref<128x512xbf16, #tpu.memory_space<vmem>>, vector<128x512xbf16>
    %cst_39 = arith.constant dense<0.000000e+00> : vector<8x512xf32>
    %120 = tpu.matmul %118, %119, %cst_39 {dimension_numbers = #tpu.dot_dimension_numbers<[1], [0], [0], [1], [0, 0, 1, 1], [], []>} : vector<8x128xbf16>, vector<128x512xbf16>, vector<8x512xf32> -> vector<8x512xf32>
    %121 = arith.addf %117, %120 : vector<8x512xf32>
    %122 = vector.extract_strided_slice %121 {offsets = [0, 0], sizes = [8, 384], strides = [1, 1]} : vector<8x512xf32> to vector<8x384xf32>
    %cst_40 = arith.constant 5.000000e-01 : f32
    %123 = vector.broadcast %cst_40 : f32 to vector<8x384xf32>
    %124 = arith.mulf %123, %122 : vector<8x384xf32>
    %125 = math.tanh %124 : vector<8x384xf32>
    %cst_41 = arith.constant 5.000000e-01 : f32
    %126 = vector.broadcast %cst_41 : f32 to vector<8x384xf32>
    %127 = arith.mulf %126, %125 : vector<8x384xf32>
    %cst_42 = arith.constant 5.000000e-01 : f32
    %128 = vector.broadcast %cst_42 : f32 to vector<8x384xf32>
    %129 = arith.addf %127, %128 : vector<8x384xf32>
    %130 = vector.extract_strided_slice %129 {offsets = [0, 0], sizes = [8, 128], strides = [1, 1]} : vector<8x384xf32> to vector<8x128xf32>
    %131 = vector.extract_strided_slice %129 {offsets = [0, 128], sizes = [8, 128], strides = [1, 1]} : vector<8x384xf32> to vector<8x128xf32>
    %132 = vector.extract_strided_slice %129 {offsets = [0, 256], sizes = [8, 128], strides = [1, 1]} : vector<8x384xf32> to vector<8x128xf32>
    %133 = vector.extract_strided_slice %121 {offsets = [0, 384], sizes = [8, 128], strides = [1, 1]} : vector<8x512xf32> to vector<8x128xf32>
    %134 = math.tanh %133 : vector<8x128xf32>
    %135 = arith.mulf %131, %114 : vector<8x128xf32>
    %136 = arith.mulf %130, %134 : vector<8x128xf32>
    %137 = arith.addf %135, %136 : vector<8x128xf32>
    %138 = math.tanh %137 : vector<8x128xf32>
    %139 = arith.mulf %132, %138 : vector<8x128xf32>
    %c48 = arith.constant 48 : index
    %c0_43 = arith.constant 0 : index
    %140 = vector.load %arg1[%c48, %c0_43] : memref<64x512xf32, #tpu.memory_space<vmem>>, vector<8x512xf32>
    %141 = arith.truncf %139 : vector<8x128xf32> to vector<8x128xbf16>
    %c0_44 = arith.constant 0 : index
    %c0_45 = arith.constant 0 : index
    %142 = vector.load %arg2[%c0_44, %c0_45] : memref<128x512xbf16, #tpu.memory_space<vmem>>, vector<128x512xbf16>
    %cst_46 = arith.constant dense<0.000000e+00> : vector<8x512xf32>
    %143 = tpu.matmul %141, %142, %cst_46 {dimension_numbers = #tpu.dot_dimension_numbers<[1], [0], [0], [1], [0, 0, 1, 1], [], []>} : vector<8x128xbf16>, vector<128x512xbf16>, vector<8x512xf32> -> vector<8x512xf32>
    %144 = arith.addf %140, %143 : vector<8x512xf32>
    %145 = vector.extract_strided_slice %144 {offsets = [0, 0], sizes = [8, 384], strides = [1, 1]} : vector<8x512xf32> to vector<8x384xf32>
    %cst_47 = arith.constant 5.000000e-01 : f32
    %146 = vector.broadcast %cst_47 : f32 to vector<8x384xf32>
    %147 = arith.mulf %146, %145 : vector<8x384xf32>
    %148 = math.tanh %147 : vector<8x384xf32>
    %cst_48 = arith.constant 5.000000e-01 : f32
    %149 = vector.broadcast %cst_48 : f32 to vector<8x384xf32>
    %150 = arith.mulf %149, %148 : vector<8x384xf32>
    %cst_49 = arith.constant 5.000000e-01 : f32
    %151 = vector.broadcast %cst_49 : f32 to vector<8x384xf32>
    %152 = arith.addf %150, %151 : vector<8x384xf32>
    %153 = vector.extract_strided_slice %152 {offsets = [0, 0], sizes = [8, 128], strides = [1, 1]} : vector<8x384xf32> to vector<8x128xf32>
    %154 = vector.extract_strided_slice %152 {offsets = [0, 128], sizes = [8, 128], strides = [1, 1]} : vector<8x384xf32> to vector<8x128xf32>
    %155 = vector.extract_strided_slice %152 {offsets = [0, 256], sizes = [8, 128], strides = [1, 1]} : vector<8x384xf32> to vector<8x128xf32>
    %156 = vector.extract_strided_slice %144 {offsets = [0, 384], sizes = [8, 128], strides = [1, 1]} : vector<8x512xf32> to vector<8x128xf32>
    %157 = math.tanh %156 : vector<8x128xf32>
    %158 = arith.mulf %154, %137 : vector<8x128xf32>
    %159 = arith.mulf %153, %157 : vector<8x128xf32>
    %160 = arith.addf %158, %159 : vector<8x128xf32>
    %161 = math.tanh %160 : vector<8x128xf32>
    %162 = arith.mulf %155, %161 : vector<8x128xf32>
    %c56 = arith.constant 56 : index
    %c0_50 = arith.constant 0 : index
    %163 = vector.load %arg1[%c56, %c0_50] : memref<64x512xf32, #tpu.memory_space<vmem>>, vector<8x512xf32>
    %164 = arith.truncf %162 : vector<8x128xf32> to vector<8x128xbf16>
    %c0_51 = arith.constant 0 : index
    %c0_52 = arith.constant 0 : index
    %165 = vector.load %arg2[%c0_51, %c0_52] : memref<128x512xbf16, #tpu.memory_space<vmem>>, vector<128x512xbf16>
    %cst_53 = arith.constant dense<0.000000e+00> : vector<8x512xf32>
    %166 = tpu.matmul %164, %165, %cst_53 {dimension_numbers = #tpu.dot_dimension_numbers<[1], [0], [0], [1], [0, 0, 1, 1], [], []>} : vector<8x128xbf16>, vector<128x512xbf16>, vector<8x512xf32> -> vector<8x512xf32>
    %167 = arith.addf %163, %166 : vector<8x512xf32>
    %168 = vector.extract_strided_slice %167 {offsets = [0, 0], sizes = [8, 384], strides = [1, 1]} : vector<8x512xf32> to vector<8x384xf32>
    %cst_54 = arith.constant 5.000000e-01 : f32
    %169 = vector.broadcast %cst_54 : f32 to vector<8x384xf32>
    %170 = arith.mulf %169, %168 : vector<8x384xf32>
    %171 = math.tanh %170 : vector<8x384xf32>
    %cst_55 = arith.constant 5.000000e-01 : f32
    %172 = vector.broadcast %cst_55 : f32 to vector<8x384xf32>
    %173 = arith.mulf %172, %171 : vector<8x384xf32>
    %cst_56 = arith.constant 5.000000e-01 : f32
    %174 = vector.broadcast %cst_56 : f32 to vector<8x384xf32>
    %175 = arith.addf %173, %174 : vector<8x384xf32>
    %176 = vector.extract_strided_slice %175 {offsets = [0, 0], sizes = [8, 128], strides = [1, 1]} : vector<8x384xf32> to vector<8x128xf32>
    %177 = vector.extract_strided_slice %175 {offsets = [0, 128], sizes = [8, 128], strides = [1, 1]} : vector<8x384xf32> to vector<8x128xf32>
    %178 = vector.extract_strided_slice %175 {offsets = [0, 256], sizes = [8, 128], strides = [1, 1]} : vector<8x384xf32> to vector<8x128xf32>
    %179 = vector.extract_strided_slice %167 {offsets = [0, 384], sizes = [8, 128], strides = [1, 1]} : vector<8x512xf32> to vector<8x128xf32>
    %180 = math.tanh %179 : vector<8x128xf32>
    %181 = arith.mulf %177, %160 : vector<8x128xf32>
    %182 = arith.mulf %176, %180 : vector<8x128xf32>
    %183 = arith.addf %181, %182 : vector<8x128xf32>
    %184 = math.tanh %183 : vector<8x128xf32>
    %185 = arith.mulf %178, %184 : vector<8x128xf32>
    %186 = arith.truncf %185 : vector<8x128xf32> to vector<8x128xbf16>
    %c0_57 = arith.constant 0 : index
    %c0_58 = arith.constant 0 : index
    %187 = vector.load %arg3[%c0_57, %c0_58] : memref<128x128xbf16, #tpu.memory_space<vmem>>, vector<128x128xbf16>
    %cst_59 = arith.constant dense<0.000000e+00> : vector<8x128xf32>
    %188 = tpu.matmul %186, %187, %cst_59 {dimension_numbers = #tpu.dot_dimension_numbers<[1], [0], [0], [1], [0, 0, 1, 1], [], []>} : vector<8x128xbf16>, vector<128x128xbf16>, vector<8x128xf32> -> vector<8x128xf32>
    %c0_60 = arith.constant 0 : index
    %c0_61 = arith.constant 0 : index
    %189 = vector.load %arg4[%c0_60, %c0_61] : memref<1x128xf32, #tpu.memory_space<vmem>>, vector<1x128xf32>
    %190 = vector.broadcast %189 : vector<1x128xf32> to vector<8x128xf32>
    %191 = arith.addf %188, %190 : vector<8x128xf32>
    %c0_62 = arith.constant 0 : index
    %c0_63 = arith.constant 0 : index
    %192 = vector.load %arg5[%c0_62, %c0_63] : memref<8x128xf32, #tpu.memory_space<vmem>>, vector<8x128xf32>
    tpu.vector_store %arg5[%c0_62, %c0_63], %191 {strides = array<i32>} : memref<8x128xf32, #tpu.memory_space<vmem>>, vector<8x128xf32>,
    return
  }
  func.func @transform_0(%arg0: i32) -> (i32, i32) {
    %c0_i32 = arith.constant 0 : i32
    %c0_i32_0 = arith.constant 0 : i32
    %c0_i32_1 = arith.constant 0 : i32
    return %c0_i32, %c0_i32_0 : i32, i32
  }
  func.func @transform_1(%arg0: i32) -> (i32, i32) {
    %c0_i32 = arith.constant 0 : i32
    %c0_i32_0 = arith.constant 0 : i32
    %c0_i32_1 = arith.constant 0 : i32
    return %c0_i32, %c0_i32_0 : i32, i32
  }
  func.func @transform_2(%arg0: i32) -> (i32, i32) {
    %c0_i32 = arith.constant 0 : i32
    %c0_i32_0 = arith.constant 0 : i32
    %c0_i32_1 = arith.constant 0 : i32
    return %c0_i32, %c0_i32_0 : i32, i32
  }
  func.func @transform_3(%arg0: i32) -> (i32, i32) {
    %c0_i32 = arith.constant 0 : i32
    %c0_i32_0 = arith.constant 0 : i32
    %c0_i32_1 = arith.constant 0 : i32
    return %c0_i32, %c0_i32_0 : i32, i32
  }
  func.func @transform_4(%arg0: i32) -> (i32, i32) {
    %c0_i32 = arith.constant 0 : i32
    %c0_i32_0 = arith.constant 0 : i32
    %c0_i32_1 = arith.constant 0 : i32
    return %c0_i32, %c0_i32_0 : i32, i32
  }
}

</mosaic_0001>

<bundles_post_ra>
// kernel: tpu_custom_call.1
= control target key start
LH: loop header
LB: loop body
LE: loop exit
PB: predicated region body
PF: predicated region fallthrough
CT: control target
= control target key end

     0   :  { %9 = vsyncpa [#allocation3], 0  ;;  %s1775_s0 = inlined_call_operand.hbm [shape: f32[64,512], index: 0, kind: input, shape index: {}]   ;;  %s1776_s1 = inlined_call_operand.hbm [shape: bf16[128,512], index: 1, kind: input, shape index: {}]   ;;  %s1777_s2 = inlined_call_operand.hbm [shape: bf16[128,128], index: 2, kind: input, shape index: {}]   ;;  %s1778_s3 = inlined_call_operand.vmem [shape: f32[1,128], index: 3, kind: input, shape index: {}]   ;;  %s1779_s4 = inlined_call_operand.hbm [shape: f32[8,128], index: 4, kind: output, shape index: {}]  }
   0x1   :  { %10 = vsyncpa [#allocation6], 0  ;;  %s29_s17 = sshll.u32 %s1776_s1, 4  ;;  %s30_s17 = int_to_ptr.hbm [resolvable:$true] %s29_s17 }
   0x2   :  { %11 = vsyncpa [#allocation4], 0  ;;  %s1384_s18 = smov [#allocation5]   ;;  %s16_s22 = sshll.u32 %s1775_s0, 4  ;;  %s17_s22 = int_to_ptr.hbm [resolvable:$true] %s16_s22 }
   0x3   :  { %s31_s19 = sshll.u32 %s1384_s18, 4  ;;  %s1385_s23 = smov 256   ;;  %s32_s19 = int_to_ptr.vmem [resolvable:$true] %s31_s19 }
   0x4   :  { %s1386_s24 = smov 16   ;;  %s1387_s25 = smov [#allocation2]  }
   0x5   :  { %37 = dma.hbm_to_vmem [thread:$0]  %s30_s17, 4096, %s32_s19, [#allocation6], %s1385_s23, %s1385_s23, %s1386_s24  }
   0x6   :  { %s18_s26 = sshll.u32 %s1387_s25, 4  ;;  %s1388_s27 = smov 512   ;;  %s19_s26 = int_to_ptr.vmem [resolvable:$true] %s18_s26 }
   0x7   :  { %s1389_s28 = smov 32   ;;  %s42_s30 = sshll.u32 %s1777_s2, 4  ;;  %s43_s30 = int_to_ptr.hbm [resolvable:$true] %s42_s30 }
   0x8   :  { %24 = dma.hbm_to_vmem [thread:$0]  %s17_s22, 4096, %s19_s26, [#allocation3], %s1388_s27, %s1388_s27, %s1389_s28  }
   0x9   :  { %s1390_s5 = smov [#allocation7]   ;;  %s1391_s7 = smov 64  }
   0xa   :  { %s44_s6 = sshll.u32 %s1390_s5, 4  ;;  %s1392_s0 = smov 4   ;;  %s45_s6 = int_to_ptr.vmem [resolvable:$true] %s44_s6 }
   0xb   :  { %50 = dma.hbm_to_vmem [thread:$0]  %s43_s30, 1024, %s45_s6, [#allocation6], %s1391_s7, %s1391_s7, %s1392_s0  }
   0xc   :  { %1378 = dma.done.wait [#allocation3], 4096  }
   0xd   :  { %1379 = vsyncadd [#allocation3], 4294963200 }
   0xe   :  { %1380 = dma.done.wait [#allocation6], 5120  }
   0xf   :  { %1381 = vsyncadd [#allocation6], 4294962176  ;;  %v1104_v0 = vld [vmem:[#allocation5 + $0xe0] sm:$0xf]  ;;  %v1180_v1 = vld [vmem:[#allocation5 + $0xec] sm:$0xf0] }
  0x10   :  { %v1178_v2 = vld [vmem:[#allocation5 + $0xe4] sm:$0xf]  ;;  %v1429_v3 = vor.u32 %v1180_v1, %v1104_v0  ;;  %v1106_v4 = vld [vmem:[#allocation5 + $0xf0] sm:$0xf0]  ;;  %v1112_v5 = vld [vmem:[#allocation5 + $0xe8] sm:$0xf] }
  0x11   :  { %v1181_v6 = vld [vmem:[#allocation5 + $0xf4] sm:$0xf0]  ;;  %v1431_v7 = vor.u32 %v1178_v2, %v1106_v4  ;;  %v1179_v9 = vld [vmem:[#allocation5 + $0xec] sm:$0xf]  ;;  %v1114_v10 = vld [vmem:[#allocation5 + $0xf8] sm:$0xf0] }
  0x12   :  { %v1433_v8 = vor.u32 %v1181_v6, %v1112_v5  ;;  %v1088_v11 = vld [vmem:[#allocation5 + $0xc0] sm:$0xf]  ;;  %262 = vmatpush.bf16.msra.mxu0 %v1429_v3  ;;  %v1436_v12 = vor.u32 %v1179_v9, %v1114_v10  ;;  %v1176_v13 = vld [vmem:[#allocation5 + $0xcc] sm:$0xf0]  ;;  %v1174_v14 = vld [vmem:[#allocation5 + $0xc4] sm:$0xf] }
  0x13   :  { %v1090_v15 = vld [vmem:[#allocation5 + $0xd0] sm:$0xf0]  ;;  %275 = vmatpush.bf16.msra.mxu1 %v1431_v7  ;;  %v1440_v16 = vor.u32 %v1176_v13, %v1088_v11  ;;  %v1096_v18 = vld [vmem:[#allocation5 + $0xc8] sm:$0xf]  ;;  %v1177_v19 = vld [vmem:[#allocation5 + $0xd4] sm:$0xf0] }
  0x14   :  { %288 = vmatpush.bf16.msra.mxu2 %v1433_v8  ;;  %v1442_v17 = vor.u32 %v1174_v14, %v1090_v15  ;;  %v1175_v20 = vld [vmem:[#allocation5 + $0xcc] sm:$0xf]  ;;  %301 = vmatpush.bf16.msra.mxu3 %v1436_v12  ;;  %v1445_v21 = vor.u32 %v1177_v19, %v1096_v18  ;;  %v1098_v22 = vld [vmem:[#allocation5 + $0xd8] sm:$0xf0]  ;;  %v1072_v23 = vld [vmem:[#allocation5 + $0xa0] sm:$0xf] }
  0x15   :  { %v1172_v24 = vld [vmem:[#allocation5 + $0xac] sm:$0xf0]  ;;  %v1447_v25 = vor.u32 %v1175_v20, %v1098_v22  ;;  %v1170_v26 = vld [vmem:[#allocation5 + $0xa4] sm:$0xf]  ;;  %v1074_v27 = vld [vmem:[#allocation5 + $0xb0] sm:$0xf0] }
  0x16   :  { %v1080_v28 = vld [vmem:[#allocation5 + $0xa8] sm:$0xf]  ;;  %263 = vmatpush.bf16.msra.mxu0 %v1440_v16  ;;  %v1450_v29 = vor.u32 %v1172_v24, %v1072_v23  ;;  %v1173_v30 = vld [vmem:[#allocation5 + $0xb4] sm:$0xf0]  ;;  %v1171_v31 = vld [vmem:[#allocation5 + $0xac] sm:$0xf]  ;;  %v1454_v33 = vor.u32 %v1170_v26, %v1074_v27 }
  0x17   :  { %v1082_v32 = vld [vmem:[#allocation5 + $0xb8] sm:$0xf0]  ;;  %276 = vmatpush.bf16.msra.mxu1 %v1442_v17  ;;  %v1456_v34 = vor.u32 %v1173_v30, %v1080_v28  ;;  %v1056_v35 = vld [vmem:[#allocation5 + $0x80] sm:$0xf]  ;;  %v1168_v36 = vld [vmem:[#allocation5 + $0x8c] sm:$0xf0] }
  0x18   :  { %289 = vmatpush.bf16.msra.mxu2 %v1445_v21  ;;  %v1166_v37 = vld [vmem:[#allocation5 + $0x84] sm:$0xf]  ;;  %302 = vmatpush.bf16.msra.mxu3 %v1447_v25  ;;  %v1459_v38 = vor.u32 %v1171_v31, %v1082_v32  ;;  %v1058_v39 = vld [vmem:[#allocation5 + $0x90] sm:$0xf0]  ;;  %v1064_v40 = vld [vmem:[#allocation5 + $0x88] sm:$0xf]  ;;  %v1462_v44 = vor.u32 %v1168_v36, %v1056_v35 }
  0x19   :  { %v1169_v41 = vld [vmem:[#allocation5 + $0x94] sm:$0xf0]  ;;  %v1167_v42 = vld [vmem:[#allocation5 + $0x8c] sm:$0xf]  ;;  %v1066_v43 = vld [vmem:[#allocation5 + $0x98] sm:$0xf0]  ;;  %v1466_v45 = vor.u32 %v1166_v37, %v1058_v39 }
  0x1a   :  { %264 = vmatpush.bf16.msra.mxu0 %v1450_v29  ;;  %v1468_v46 = vor.u32 %v1169_v41, %v1064_v40  ;;  %v1040_v47 = vld [vmem:[#allocation5 + $0x60] sm:$0xf]  ;;  %v1164_v48 = vld [vmem:[#allocation5 + $0x6c] sm:$0xf0]  ;;  %v1162_v49 = vld [vmem:[#allocation5 + $0x64] sm:$0xf]  ;;  %v1471_v50 = vor.u32 %v1167_v42, %v1066_v43 }
  0x1b   :  { %277 = vmatpush.bf16.msra.mxu1 %v1454_v33  ;;  %v1042_v51 = vld [vmem:[#allocation5 + $0x70] sm:$0xf0]  ;;  %v1048_v52 = vld [vmem:[#allocation5 + $0x68] sm:$0xf]  ;;  %v1165_v53 = vld [vmem:[#allocation5 + $0x74] sm:$0xf0]  ;;  %v1474_v56 = vor.u32 %v1164_v48, %v1040_v47 }
  0x1c   :  { %290 = vmatpush.bf16.msra.mxu2 %v1456_v34  ;;  %303 = vmatpush.bf16.msra.mxu3 %v1459_v38  ;;  %v1163_v54 = vld [vmem:[#allocation5 + $0x6c] sm:$0xf]  ;;  %v1050_v55 = vld [vmem:[#allocation5 + $0x78] sm:$0xf0]  ;;  %v1478_v57 = vor.u32 %v1162_v49, %v1042_v51  ;;  %v1480_v58 = vor.u32 %v1165_v53, %v1048_v52  ;;  %v1024_v59 = vld [vmem:[#allocation5 + $0x40] sm:$0xf] }
  0x1d   :  { %v1160_v60 = vld [vmem:[#allocation5 + $0x4c] sm:$0xf0]  ;;  %v1158_v61 = vld [vmem:[#allocation5 + $0x44] sm:$0xf]  ;;  %v1483_v62 = vor.u32 %v1163_v54, %v1050_v55  ;;  %v1026_v63 = vld [vmem:[#allocation5 + $0x50] sm:$0xf0] }
  0x1e   :  { %265 = vmatpush.bf16.msra.mxu0 %v1462_v44  ;;  %v1032_v0 = vld [vmem:[#allocation5 + $0x48] sm:$0xf]  ;;  %v1161_v1 = vld [vmem:[#allocation5 + $0x54] sm:$0xf0]  ;;  %v1159_v2 = vld [vmem:[#allocation5 + $0x4c] sm:$0xf]  ;;  %v1486_v5 = vor.u32 %v1160_v60, %v1024_v59  ;;  %v1490_v9 = vor.u32 %v1158_v61, %v1026_v63 }
  0x1f   :  { %278 = vmatpush.bf16.msra.mxu1 %v1466_v45  ;;  %v1034_v4 = vld [vmem:[#allocation5 + $0x58] sm:$0xf0]  ;;  %v1008_v6 = vld [vmem:[#allocation5 + $0x20] sm:$0xf]  ;;  %v1492_v10 = vor.u32 %v1161_v1, %v1032_v0  ;;  %v1156_v11 = vld [vmem:[#allocation5 + $0x2c] sm:$0xf0] }
  0x20   :  { %291 = vmatpush.bf16.msra.mxu2 %v1468_v46  ;;  %304 = vmatpush.bf16.msra.mxu3 %v1471_v50  ;;  %v1154_v13 = vld [vmem:[#allocation5 + $0x24] sm:$0xf]  ;;  %v1010_v14 = vld [vmem:[#allocation5 + $0x30] sm:$0xf0]  ;;  %v1495_v15 = vor.u32 %v1159_v2, %v1034_v4  ;;  %v1016_v18 = vld [vmem:[#allocation5 + $0x28] sm:$0xf]  ;;  %v1498_v23 = vor.u32 %v1156_v11, %v1008_v6 }
  0x21   :  { %v1157_v19 = vld [vmem:[#allocation5 + $0x34] sm:$0xf0]  ;;  %v1155_v20 = vld [vmem:[#allocation5 + $0x2c] sm:$0xf]  ;;  %v1018_v22 = vld [vmem:[#allocation5 + $0x38] sm:$0xf0]  ;;  %v1502_v24 = vor.u32 %v1154_v13, %v1010_v14 }
  0x22   :  { %266 = vmatpush.bf16.msra.mxu0 %v1474_v56  ;;  %v1504_v26 = vor.u32 %v1157_v19, %v1016_v18  ;;  %v992_v27 = vld [vmem:[#allocation5] sm:$0xf]  ;;  %v1152_v28 = vld [vmem:[#allocation5 + $0xc] sm:$0xf0]  ;;  %v1150_v30 = vld [vmem:[#allocation5 + $0x4] sm:$0xf]  ;;  %v1507_v31 = vor.u32 %v1155_v20, %v1018_v22 }
  0x23   :  { %279 = vmatpush.bf16.msra.mxu1 %v1478_v57  ;;  %v994_v32 = vld [vmem:[#allocation5 + $0x10] sm:$0xf0]  ;;  %v1000_v35 = vld [vmem:[#allocation5 + $0x8] sm:$0xf]  ;;  %v1153_v36 = vld [vmem:[#allocation5 + $0x14] sm:$0xf0]  ;;  %v1510_v40 = vor.u32 %v1152_v28, %v992_v27 }
  0x24   :  { %292 = vmatpush.bf16.msra.mxu2 %v1480_v58  ;;  %305 = vmatpush.bf16.msra.mxu3 %v1483_v62  ;;  %v1151_v37 = vld [vmem:[#allocation5 + $0xc] sm:$0xf]  ;;  %v1002_v39 = vld [vmem:[#allocation5 + $0x18] sm:$0xf0]  ;;  %v1514_v41 = vor.u32 %v1150_v30, %v994_v32  ;;  %v1516_v42 = vor.u32 %v1153_v36, %v1000_v35  ;;  %v1393_v47 = vmov 0   ;;  %v66_v48 = vld [vmem:[#allocation2] sm:$0xff] }
  0x25   :  { %v1519_v43 = vor.u32 %v1151_v37, %v1002_v39  ;;  %v67_v49 = vld [vmem:[#allocation2 + $0x8] sm:$0xff]  ;;  %v68_v60 = vld [vmem:[#allocation2 + $0x10] sm:$0xff]  ;;  %v69_v61 = vld [vmem:[#allocation2 + $0x18] sm:$0xff]  ;;  %s1394_s9 = smov [#allocation8]   ;;  %s979_s13 = sshll.u32 %s1779_s4, 4  ;;  %s980_s13 = int_to_ptr.hbm [resolvable:$true] %s979_s13 }
  0x26   :  { %267 = vmatpush.bf16.msra.mxu0 %v1486_v5  ;;  %s977_s10 = sshll.u32 %s1394_s9, 4  ;;  %s978_s10 = int_to_ptr.vmem [resolvable:$true] %s977_s10 }
  0x27   :  { %280 = vmatpush.bf16.msra.mxu1 %v1490_v9 }
  0x28   :  { %293 = vmatpush.bf16.msra.mxu2 %v1492_v10  ;;  %306 = vmatpush.bf16.msra.mxu3 %v1495_v15 }
  0x2a   :  { %268 = vmatpush.bf16.msra.mxu0 %v1498_v23 }
  0x2b   :  { %281 = vmatpush.bf16.msra.mxu1 %v1502_v24 }
  0x2c   :  { %294 = vmatpush.bf16.msra.mxu2 %v1504_v26  ;;  %307 = vmatpush.bf16.msra.mxu3 %v1507_v31 }
  0x2e   :  { %269 = vmatpush.bf16.msra.mxu0 %v1510_v40 }
  0x2f   :  { %282 = vmatpush.bf16.msra.mxu1 %v1514_v41 }
  0x30   :  { %295 = vmatpush.bf16.msra.mxu2 %v1516_v42  ;;  %308 = vmatpush.bf16.msra.mxu3 %v1519_v43 }
  0x31   :  { %270 = vmatmul.bf16.vlgmr.msra.gmra.mxu0 %v1393_v47 }
  0x32   :  { %341 = vmatpush.bf16.msrb.mxu0 %v1429_v3  ;;  %283 = vmatmul.bf16.vlgmr.msra.gmra.mxu1 %v1393_v47 }
  0x33   :  { %354 = vmatpush.bf16.msrb.mxu1 %v1431_v7  ;;  %296 = vmatmul.bf16.vlgmr.msra.gmra.mxu2 %v1393_v47 }
  0x34   :  { %309 = vmatmul.bf16.vlgmr.msra.gmra.mxu3 %v1393_v47  ;;  %367 = vmatpush.bf16.msrb.mxu2 %v1433_v8 }
  0x35   :  { %380 = vmatpush.bf16.msrb.mxu3 %v1436_v12 }
  0x36   :  { %342 = vmatpush.bf16.msrb.mxu0 %v1440_v16 }
  0x37   :  { %355 = vmatpush.bf16.msrb.mxu1 %v1442_v17 }
  0x38   :  { %368 = vmatpush.bf16.msrb.mxu2 %v1445_v21 }
  0x39   :  { %381 = vmatpush.bf16.msrb.mxu3 %v1447_v25 }
  0x3a   :  { %343 = vmatpush.bf16.msrb.mxu0 %v1450_v29 }
  0x3b   :  { %356 = vmatpush.bf16.msrb.mxu1 %v1454_v33 }
  0x3c   :  { %369 = vmatpush.bf16.msrb.mxu2 %v1456_v34 }
  0x3d   :  { %382 = vmatpush.bf16.msrb.mxu3 %v1459_v38 }
  0x3e   :  { %344 = vmatpush.bf16.msrb.mxu0 %v1462_v44 }
  0x3f   :  { %357 = vmatpush.bf16.msrb.mxu1 %v1466_v45 }
  0x40   :  { %370 = vmatpush.bf16.msrb.mxu2 %v1468_v46 }
  0x41   :  { %383 = vmatpush.bf16.msrb.mxu3 %v1471_v50 }
  0x42   :  { %345 = vmatpush.bf16.msrb.mxu0 %v1474_v56 }
  0x43   :  { %358 = vmatpush.bf16.msrb.mxu1 %v1478_v57 }
  0x44   :  { %371 = vmatpush.bf16.msrb.mxu2 %v1480_v58 }
  0x45   :  { %384 = vmatpush.bf16.msrb.mxu3 %v1483_v62 }
  0x46   :  { %346 = vmatpush.bf16.msrb.mxu0 %v1486_v5 }
  0x47   :  { %359 = vmatpush.bf16.msrb.mxu1 %v1490_v9 }
  0x48   :  { %372 = vmatpush.bf16.msrb.mxu2 %v1492_v10 }
  0x49   :  { %385 = vmatpush.bf16.msrb.mxu3 %v1495_v15 }
  0x4a   :  { %347 = vmatpush.bf16.msrb.mxu0 %v1498_v23 }
  0x4b   :  { %360 = vmatpush.bf16.msrb.mxu1 %v1502_v24 }
  0x4c   :  { %373 = vmatpush.bf16.msrb.mxu2 %v1504_v26 }
  0x4d   :  { %386 = vmatpush.bf16.msrb.mxu3 %v1507_v31 }
  0x4e   :  { %348 = vmatpush.bf16.msrb.mxu0 %v1510_v40 }
  0x4f   :  { %361 = vmatpush.bf16.msrb.mxu1 %v1514_v41 }
  0x50   :  { %374 = vmatpush.bf16.msrb.mxu2 %v1516_v42 }
  0x51   :  { %387 = vmatpush.bf16.msrb.mxu3 %v1519_v43 }
  0x52   :  { %420 = vmatpush.bf16.msra.mxu0 %v1429_v3 }
  0x53   :  { %433 = vmatpush.bf16.msra.mxu1 %v1431_v7 }
  0x54   :  { %446 = vmatpush.bf16.msra.mxu2 %v1433_v8 }
  0x55   :  { %459 = vmatpush.bf16.msra.mxu3 %v1436_v12 }
  0x56   :  { %421 = vmatpush.bf16.msra.mxu0 %v1440_v16 }
  0x57   :  { %434 = vmatpush.bf16.msra.mxu1 %v1442_v17 }
  0x58   :  { %447 = vmatpush.bf16.msra.mxu2 %v1445_v21 }
  0x59   :  { %460 = vmatpush.bf16.msra.mxu3 %v1447_v25 }
  0x5a   :  { %422 = vmatpush.bf16.msra.mxu0 %v1450_v29 }
  0x5b   :  { %435 = vmatpush.bf16.msra.mxu1 %v1454_v33 }
  0x5c   :  { %448 = vmatpush.bf16.msra.mxu2 %v1456_v34 }
  0x5d   :  { %461 = vmatpush.bf16.msra.mxu3 %v1459_v38 }
  0x5e   :  { %423 = vmatpush.bf16.msra.mxu0 %v1462_v44 }
  0x5f   :  { %436 = vmatpush.bf16.msra.mxu1 %v1466_v45 }
  0x60   :  { %449 = vmatpush.bf16.msra.mxu2 %v1468_v46 }
  0x61   :  { %462 = vmatpush.bf16.msra.mxu3 %v1471_v50 }
  0x62   :  { %424 = vmatpush.bf16.msra.mxu0 %v1474_v56 }
  0x63   :  { %437 = vmatpush.bf16.msra.mxu1 %v1478_v57 }
  0x64   :  { %450 = vmatpush.bf16.msra.mxu2 %v1480_v58 }
  0x65   :  { %463 = vmatpush.bf16.msra.mxu3 %v1483_v62 }
  0x66   :  { %425 = vmatpush.bf16.msra.mxu0 %v1486_v5 }
  0x67   :  { %438 = vmatpush.bf16.msra.mxu1 %v1490_v9 }
  0x68   :  { %451 = vmatpush.bf16.msra.mxu2 %v1492_v10 }
  0x69   :  { %464 = vmatpush.bf16.msra.mxu3 %v1495_v15 }
  0x6a   :  { %426 = vmatpush.bf16.msra.mxu0 %v1498_v23 }
  0x6b   :  { %439 = vmatpush.bf16.msra.mxu1 %v1502_v24 }
  0x6c   :  { %452 = vmatpush.bf16.msra.mxu2 %v1504_v26 }
  0x6d   :  { %465 = vmatpush.bf16.msra.mxu3 %v1507_v31 }
  0x6e   :  { %427 = vmatpush.bf16.msra.mxu0 %v1510_v40 }
  0x6f   :  { %440 = vmatpush.bf16.msra.mxu1 %v1514_v41 }
  0x70   :  { %453 = vmatpush.bf16.msra.mxu2 %v1516_v42 }
  0x71   :  { %466 = vmatpush.bf16.msra.mxu3 %v1519_v43 }
  0xae   :  { %v271_v51 = vpop.f32.mrf.mxu0 }
  0xaf   :  { %v314_v52 = vadd.f32 %v271_v51, %v66_v48  ;;  %v284_v53 = vpop.f32.mrf.mxu1 }
  0xb0   :  { %v315_v54 = vadd.f32 %v284_v53, %v67_v49  ;;  %v337_v53 = vld [vmem:[#allocation2 + $0x28] sm:$0xff] }
  0xb1   :  { %v318_v55 = vmul.f32 0.5, %v314_v52  ;;  %v336_v52 = vld [vmem:[#allocation2 + $0x20] sm:$0xff] }
  0xb2   :  { %v319_v59 = vmul.f32 0.5, %v315_v54 }
  0xb3   :  { %1202 = vtanh.f32 %v318_v55 }
  0xb4   :  { %1204 = vtanh.f32 %v319_v59 }
  0xb6   :  { %v297_v63 = vpop.f32.mrf.mxu2  ;;  %v273_v2 = vpop.f32.mrf.mxu0 }
  0xb7   :  { %v316_v0 = vadd.f32 %v297_v63, %v68_v60  ;;  %v310_v1 = vpop.f32.mrf.mxu3  ;;  %v286_v6 = vpop.f32.mrf.mxu1 }
  0xb8   :  { %v317_v4 = vadd.f32 %v310_v1, %v69_v61  ;;  %v339_v1 = vld [vmem:[#allocation2 + $0x38] sm:$0xff] }
  0xb9   :  { %v320_v11 = vmul.f32 0.5, %v316_v0  ;;  %v1203_v13 = vpop.eup %1202  ;;  %v338_v0 = vld [vmem:[#allocation2 + $0x30] sm:$0xff] }
  0xba   :  { %1206 = vtanh.f32 %v317_v4  ;;  %v1205_v14 = vpop.eup %1204  ;;  %v324_v18 = vmul.f32 0.5, %v1203_v13 }
  0xbb   :  { %1208 = vtanh.f32 %v320_v11  ;;  %v325_v19 = vmul.f32 0.5, %v1205_v14 }
  0xbc   :  { %v327_v20 = vadd.f32 0.5, %v324_v18 }
  0xbd   :  { %v328_v22 = vadd.f32 0.5, %v325_v19 }
  0xbe   :  { %v299_v27 = vpop.f32.mrf.mxu2 }
  0xbf   :  { %v312_v28 = vpop.f32.mrf.mxu3  ;;  %v331_v32 = vmul.f32 0.0, %v328_v22 }
  0xc0   :  { %v1207_v30 = vpop.eup %1206 }
  0xc1   :  { %v1209_v35 = vpop.eup %1208  ;;  %v332_v36 = vmul.f32 %v1207_v30, %v327_v20 }
  0xc2   :  { %v326_v39 = vmul.f32 0.5, %v1209_v35 }
  0xc3   :  { %v1589_v37 = vadd.f32 %v332_v36, %v331_v32 }
  0xc4   :  { %v329_v47 = vadd.f32 0.5, %v326_v39 }
  0xc5   :  { %1210 = vtanh.f32 %v1589_v37 }
  0xcb   :  { %v1211_v48 = vpop.eup %1210 }
  0xcc   :  { %v335_v49 = vmul.f32 %v1211_v48, %v329_v47 }
  0xce   :  { %v340_v51 = vpack.c.bf16 %v335_v49, %v335_v49 }
  0xd0   :  { %349 = vmatmul.bf16.vlgmr.msrb.gmra.mxu0 %v340_v51  ;;  %362 = vmatmul.bf16.vlgmr.msrb.gmra.mxu1 %v340_v51 }
  0xd1   :  { %375 = vmatmul.bf16.vlgmr.msrb.gmra.mxu2 %v340_v51  ;;  %388 = vmatmul.bf16.vlgmr.msrb.gmra.mxu3 %v340_v51 }
  0xd2   :  { %499 = vmatpush.bf16.msrb.mxu0 %v1429_v3  ;;  %512 = vmatpush.bf16.msrb.mxu1 %v1431_v7 }
  0xd3   :  { %525 = vmatpush.bf16.msrb.mxu2 %v1433_v8  ;;  %538 = vmatpush.bf16.msrb.mxu3 %v1436_v12 }
  0xd6   :  { %500 = vmatpush.bf16.msrb.mxu0 %v1440_v16  ;;  %513 = vmatpush.bf16.msrb.mxu1 %v1442_v17 }
  0xd7   :  { %526 = vmatpush.bf16.msrb.mxu2 %v1445_v21  ;;  %539 = vmatpush.bf16.msrb.mxu3 %v1447_v25 }
  0xda   :  { %501 = vmatpush.bf16.msrb.mxu0 %v1450_v29  ;;  %514 = vmatpush.bf16.msrb.mxu1 %v1454_v33 }
  0xdb   :  { %527 = vmatpush.bf16.msrb.mxu2 %v1456_v34  ;;  %540 = vmatpush.bf16.msrb.mxu3 %v1459_v38 }
  0xde   :  { %502 = vmatpush.bf16.msrb.mxu0 %v1462_v44  ;;  %515 = vmatpush.bf16.msrb.mxu1 %v1466_v45 }
  0xdf   :  { %528 = vmatpush.bf16.msrb.mxu2 %v1468_v46  ;;  %541 = vmatpush.bf16.msrb.mxu3 %v1471_v50 }
  0xe2   :  { %503 = vmatpush.bf16.msrb.mxu0 %v1474_v56  ;;  %516 = vmatpush.bf16.msrb.mxu1 %v1478_v57 }
  0xe3   :  { %529 = vmatpush.bf16.msrb.mxu2 %v1480_v58  ;;  %542 = vmatpush.bf16.msrb.mxu3 %v1483_v62 }
  0xe6   :  { %504 = vmatpush.bf16.msrb.mxu0 %v1486_v5  ;;  %517 = vmatpush.bf16.msrb.mxu1 %v1490_v9 }
  0xe7   :  { %530 = vmatpush.bf16.msrb.mxu2 %v1492_v10  ;;  %543 = vmatpush.bf16.msrb.mxu3 %v1495_v15 }
  0xea   :  { %505 = vmatpush.bf16.msrb.mxu0 %v1498_v23  ;;  %518 = vmatpush.bf16.msrb.mxu1 %v1502_v24 }
  0xeb   :  { %531 = vmatpush.bf16.msrb.mxu2 %v1504_v26  ;;  %544 = vmatpush.bf16.msrb.mxu3 %v1507_v31 }
  0xee   :  { %506 = vmatpush.bf16.msrb.mxu0 %v1510_v40  ;;  %519 = vmatpush.bf16.msrb.mxu1 %v1514_v41 }
  0xef   :  { %532 = vmatpush.bf16.msrb.mxu2 %v1516_v42  ;;  %545 = vmatpush.bf16.msrb.mxu3 %v1519_v43 }
 0x14d   :  { %v350_v54 = vpop.f32.mrf.mxu0  ;;  %v363_v55 = vpop.f32.mrf.mxu1 }
 0x14e   :  { %v393_v59 = vadd.f32 %v350_v54, %v336_v52  ;;  %v394_v60 = vadd.f32 %v363_v55, %v337_v53 }
 0x150   :  { %v397_v61 = vmul.f32 0.5, %v393_v59  ;;  %v398_v63 = vmul.f32 0.5, %v394_v60  ;;  %v416_v59 = vld [vmem:[#allocation2 + $0x48] sm:$0xff] }
 0x152   :  { %1212 = vtanh.f32 %v397_v61 }
 0x153   :  { %1214 = vtanh.f32 %v398_v63 }
 0x154   :  { %v376_v2 = vpop.f32.mrf.mxu2  ;;  %v389_v4 = vpop.f32.mrf.mxu3 }
 0x155   :  { %v395_v6 = vadd.f32 %v376_v2, %v338_v0  ;;  %v396_v11 = vadd.f32 %v389_v4, %v339_v1  ;;  %v352_v13 = vpop.f32.mrf.mxu0  ;;  %v365_v14 = vpop.f32.mrf.mxu1  ;;  %v417_v4 = vld [vmem:[#allocation2 + $0x50] sm:$0xff] }
 0x157   :  { %v399_v18 = vmul.f32 0.5, %v395_v6  ;;  %1216 = vtanh.f32 %v396_v11  ;;  %v418_v6 = vld [vmem:[#allocation2 + $0x58] sm:$0xff] }
 0x158   :  { %v1213_v19 = vpop.eup %1212 }
 0x159   :  { %v1215_v20 = vpop.eup %1214  ;;  %v403_v22 = vmul.f32 0.5, %v1213_v19  ;;  %1218 = vtanh.f32 %v399_v18 }
 0x15a   :  { %v404_v27 = vmul.f32 0.5, %v1215_v20 }
 0x15b   :  { %v406_v28 = vadd.f32 0.5, %v403_v22 }
 0x15c   :  { %v407_v30 = vadd.f32 0.5, %v404_v27  ;;  %v378_v32 = vpop.f32.mrf.mxu2  ;;  %v391_v35 = vpop.f32.mrf.mxu3 }
 0x15d   :  { %v1217_v36 = vpop.eup %1216 }
 0x15e   :  { %v410_v39 = vmul.f32 %v407_v30, %v1589_v37  ;;  %v411_v47 = vmul.f32 %v1217_v36, %v406_v28  ;;  %v415_v37 = vld [vmem:[#allocation2 + $0x40] sm:$0xff] }
 0x15f   :  { %v1219_v48 = vpop.eup %1218 }
 0x160   :  { %v1625_v49 = vadd.f32 %v411_v47, %v410_v39  ;;  %v405_v51 = vmul.f32 0.5, %v1219_v48 }
 0x162   :  { %1220 = vtanh.f32 %v1625_v49  ;;  %v408_v52 = vadd.f32 0.5, %v405_v51 }
 0x168   :  { %v1221_v53 = vpop.eup %1220 }
 0x169   :  { %v414_v54 = vmul.f32 %v1221_v53, %v408_v52 }
 0x16b   :  { %v419_v55 = vpack.c.bf16 %v414_v54, %v414_v54 }
 0x16d   :  { %428 = vmatmul.bf16.vlgmr.msra.gmra.mxu0 %v419_v55  ;;  %441 = vmatmul.bf16.vlgmr.msra.gmra.mxu1 %v419_v55 }
 0x16e   :  { %454 = vmatmul.bf16.vlgmr.msra.gmra.mxu2 %v419_v55  ;;  %467 = vmatmul.bf16.vlgmr.msra.gmra.mxu3 %v419_v55 }
 0x16f   :  { %578 = vmatpush.bf16.msra.mxu0 %v1429_v3  ;;  %591 = vmatpush.bf16.msra.mxu1 %v1431_v7 }
 0x170   :  { %604 = vmatpush.bf16.msra.mxu2 %v1433_v8  ;;  %617 = vmatpush.bf16.msra.mxu3 %v1436_v12 }
 0x173   :  { %579 = vmatpush.bf16.msra.mxu0 %v1440_v16  ;;  %592 = vmatpush.bf16.msra.mxu1 %v1442_v17 }
 0x174   :  { %605 = vmatpush.bf16.msra.mxu2 %v1445_v21  ;;  %618 = vmatpush.bf16.msra.mxu3 %v1447_v25 }
 0x177   :  { %580 = vmatpush.bf16.msra.mxu0 %v1450_v29  ;;  %593 = vmatpush.bf16.msra.mxu1 %v1454_v33 }
 0x178   :  { %606 = vmatpush.bf16.msra.mxu2 %v1456_v34  ;;  %619 = vmatpush.bf16.msra.mxu3 %v1459_v38 }
 0x17b   :  { %581 = vmatpush.bf16.msra.mxu0 %v1462_v44  ;;  %594 = vmatpush.bf16.msra.mxu1 %v1466_v45 }
 0x17c   :  { %607 = vmatpush.bf16.msra.mxu2 %v1468_v46  ;;  %620 = vmatpush.bf16.msra.mxu3 %v1471_v50 }
 0x17f   :  { %582 = vmatpush.bf16.msra.mxu0 %v1474_v56  ;;  %595 = vmatpush.bf16.msra.mxu1 %v1478_v57 }
 0x180   :  { %608 = vmatpush.bf16.msra.mxu2 %v1480_v58  ;;  %621 = vmatpush.bf16.msra.mxu3 %v1483_v62 }
 0x183   :  { %583 = vmatpush.bf16.msra.mxu0 %v1486_v5  ;;  %596 = vmatpush.bf16.msra.mxu1 %v1490_v9 }
 0x184   :  { %609 = vmatpush.bf16.msra.mxu2 %v1492_v10  ;;  %622 = vmatpush.bf16.msra.mxu3 %v1495_v15 }
 0x187   :  { %584 = vmatpush.bf16.msra.mxu0 %v1498_v23  ;;  %597 = vmatpush.bf16.msra.mxu1 %v1502_v24 }
 0x188   :  { %610 = vmatpush.bf16.msra.mxu2 %v1504_v26  ;;  %623 = vmatpush.bf16.msra.mxu3 %v1507_v31 }
 0x18b   :  { %585 = vmatpush.bf16.msra.mxu0 %v1510_v40  ;;  %598 = vmatpush.bf16.msra.mxu1 %v1514_v41 }
 0x18c   :  { %611 = vmatpush.bf16.msra.mxu2 %v1516_v42  ;;  %624 = vmatpush.bf16.msra.mxu3 %v1519_v43 }
 0x1ea   :  { %v429_v60 = vpop.f32.mrf.mxu0  ;;  %v442_v61 = vpop.f32.mrf.mxu1 }
 0x1eb   :  { %v472_v63 = vadd.f32 %v429_v60, %v415_v37  ;;  %v473_v0 = vadd.f32 %v442_v61, %v416_v59 }
 0x1ed   :  { %v476_v1 = vmul.f32 0.5, %v472_v63  ;;  %v477_v2 = vmul.f32 0.5, %v473_v0  ;;  %v495_v63 = vld [vmem:[#allocation2 + $0x68] sm:$0xff] }
 0x1ef   :  { %1222 = vtanh.f32 %v476_v1 }
 0x1f0   :  { %1224 = vtanh.f32 %v477_v2 }
 0x1f1   :  { %v455_v11 = vpop.f32.mrf.mxu2  ;;  %v468_v13 = vpop.f32.mrf.mxu3 }
 0x1f2   :  { %v474_v14 = vadd.f32 %v455_v11, %v417_v4  ;;  %v475_v18 = vadd.f32 %v468_v13, %v418_v6  ;;  %v431_v19 = vpop.f32.mrf.mxu0  ;;  %v444_v20 = vpop.f32.mrf.mxu1  ;;  %v496_v13 = vld [vmem:[#allocation2 + $0x70] sm:$0xff] }
 0x1f4   :  { %v478_v22 = vmul.f32 0.5, %v474_v14  ;;  %1226 = vtanh.f32 %v475_v18  ;;  %v497_v14 = vld [vmem:[#allocation2 + $0x78] sm:$0xff] }
 0x1f5   :  { %v1223_v27 = vpop.eup %1222 }
 0x1f6   :  { %v1225_v28 = vpop.eup %1224  ;;  %v482_v30 = vmul.f32 0.5, %v1223_v27  ;;  %1228 = vtanh.f32 %v478_v22 }
 0x1f7   :  { %v483_v32 = vmul.f32 0.5, %v1225_v28 }
 0x1f8   :  { %v485_v35 = vadd.f32 0.5, %v482_v30 }
 0x1f9   :  { %v486_v36 = vadd.f32 0.5, %v483_v32  ;;  %v457_v39 = vpop.f32.mrf.mxu2  ;;  %v470_v47 = vpop.f32.mrf.mxu3 }
 0x1fa   :  { %v1227_v48 = vpop.eup %1226 }
 0x1fb   :  { %v489_v51 = vmul.f32 %v486_v36, %v1625_v49  ;;  %v490_v52 = vmul.f32 %v1227_v48, %v485_v35  ;;  %v494_v49 = vld [vmem:[#allocation2 + $0x60] sm:$0xff] }
 0x1fc   :  { %v1229_v53 = vpop.eup %1228 }
 0x1fd   :  { %v1661_v54 = vadd.f32 %v490_v52, %v489_v51  ;;  %v484_v55 = vmul.f32 0.5, %v1229_v53 }
 0x1ff   :  { %1230 = vtanh.f32 %v1661_v54  ;;  %v487_v37 = vadd.f32 0.5, %v484_v55 }
 0x205   :  { %v1231_v59 = vpop.eup %1230 }
 0x206   :  { %v493_v60 = vmul.f32 %v1231_v59, %v487_v37 }
 0x208   :  { %v498_v61 = vpack.c.bf16 %v493_v60, %v493_v60 }
 0x20a   :  { %507 = vmatmul.bf16.vlgmr.msrb.gmra.mxu0 %v498_v61  ;;  %520 = vmatmul.bf16.vlgmr.msrb.gmra.mxu1 %v498_v61 }
 0x20b   :  { %533 = vmatmul.bf16.vlgmr.msrb.gmra.mxu2 %v498_v61  ;;  %546 = vmatmul.bf16.vlgmr.msrb.gmra.mxu3 %v498_v61 }
 0x20c   :  { %657 = vmatpush.bf16.msrb.mxu0 %v1429_v3  ;;  %670 = vmatpush.bf16.msrb.mxu1 %v1431_v7 }
 0x20d   :  { %683 = vmatpush.bf16.msrb.mxu2 %v1433_v8  ;;  %696 = vmatpush.bf16.msrb.mxu3 %v1436_v12 }
 0x210   :  { %658 = vmatpush.bf16.msrb.mxu0 %v1440_v16  ;;  %671 = vmatpush.bf16.msrb.mxu1 %v1442_v17 }
 0x211   :  { %684 = vmatpush.bf16.msrb.mxu2 %v1445_v21  ;;  %697 = vmatpush.bf16.msrb.mxu3 %v1447_v25 }
 0x214   :  { %659 = vmatpush.bf16.msrb.mxu0 %v1450_v29  ;;  %672 = vmatpush.bf16.msrb.mxu1 %v1454_v33 }
 0x215   :  { %685 = vmatpush.bf16.msrb.mxu2 %v1456_v34  ;;  %698 = vmatpush.bf16.msrb.mxu3 %v1459_v38 }
 0x218   :  { %660 = vmatpush.bf16.msrb.mxu0 %v1462_v44  ;;  %673 = vmatpush.bf16.msrb.mxu1 %v1466_v45 }
 0x219   :  { %686 = vmatpush.bf16.msrb.mxu2 %v1468_v46  ;;  %699 = vmatpush.bf16.msrb.mxu3 %v1471_v50 }
 0x21c   :  { %661 = vmatpush.bf16.msrb.mxu0 %v1474_v56  ;;  %674 = vmatpush.bf16.msrb.mxu1 %v1478_v57 }
 0x21d   :  { %687 = vmatpush.bf16.msrb.mxu2 %v1480_v58  ;;  %700 = vmatpush.bf16.msrb.mxu3 %v1483_v62 }
 0x220   :  { %662 = vmatpush.bf16.msrb.mxu0 %v1486_v5  ;;  %675 = vmatpush.bf16.msrb.mxu1 %v1490_v9 }
 0x221   :  { %688 = vmatpush.bf16.msrb.mxu2 %v1492_v10  ;;  %701 = vmatpush.bf16.msrb.mxu3 %v1495_v15 }
 0x224   :  { %663 = vmatpush.bf16.msrb.mxu0 %v1498_v23  ;;  %676 = vmatpush.bf16.msrb.mxu1 %v1502_v24 }
 0x225   :  { %689 = vmatpush.bf16.msrb.mxu2 %v1504_v26  ;;  %702 = vmatpush.bf16.msrb.mxu3 %v1507_v31 }
 0x228   :  { %664 = vmatpush.bf16.msrb.mxu0 %v1510_v40  ;;  %677 = vmatpush.bf16.msrb.mxu1 %v1514_v41 }
 0x229   :  { %690 = vmatpush.bf16.msrb.mxu2 %v1516_v42  ;;  %703 = vmatpush.bf16.msrb.mxu3 %v1519_v43 }
 0x287   :  { %v508_v0 = vpop.f32.mrf.mxu0  ;;  %v521_v1 = vpop.f32.mrf.mxu1 }
 0x288   :  { %v551_v2 = vadd.f32 %v508_v0, %v494_v49  ;;  %v552_v4 = vadd.f32 %v521_v1, %v495_v63 }
 0x28a   :  { %v555_v6 = vmul.f32 0.5, %v551_v2  ;;  %v556_v11 = vmul.f32 0.5, %v552_v4  ;;  %v574_v2 = vld [vmem:[#allocation2 + $0x88] sm:$0xff] }
 0x28c   :  { %1232 = vtanh.f32 %v555_v6 }
 0x28d   :  { %1234 = vtanh.f32 %v556_v11 }
 0x28e   :  { %v534_v18 = vpop.f32.mrf.mxu2  ;;  %v547_v19 = vpop.f32.mrf.mxu3 }
 0x28f   :  { %v553_v20 = vadd.f32 %v534_v18, %v496_v13  ;;  %v554_v22 = vadd.f32 %v547_v19, %v497_v14  ;;  %v510_v27 = vpop.f32.mrf.mxu0  ;;  %v523_v28 = vpop.f32.mrf.mxu1  ;;  %v575_v19 = vld [vmem:[#allocation2 + $0x90] sm:$0xff] }
 0x291   :  { %v557_v30 = vmul.f32 0.5, %v553_v20  ;;  %1236 = vtanh.f32 %v554_v22  ;;  %v576_v20 = vld [vmem:[#allocation2 + $0x98] sm:$0xff] }
 0x292   :  { %v1233_v32 = vpop.eup %1232 }
 0x293   :  { %v1235_v35 = vpop.eup %1234  ;;  %v561_v36 = vmul.f32 0.5, %v1233_v32  ;;  %1238 = vtanh.f32 %v557_v30 }
 0x294   :  { %v562_v39 = vmul.f32 0.5, %v1235_v35 }
 0x295   :  { %v564_v47 = vadd.f32 0.5, %v561_v36 }
 0x296   :  { %v565_v48 = vadd.f32 0.5, %v562_v39  ;;  %v536_v51 = vpop.f32.mrf.mxu2  ;;  %v549_v52 = vpop.f32.mrf.mxu3 }
 0x297   :  { %v1237_v53 = vpop.eup %1236 }
 0x298   :  { %v568_v55 = vmul.f32 %v565_v48, %v1661_v54  ;;  %v569_v37 = vmul.f32 %v1237_v53, %v564_v47  ;;  %v573_v54 = vld [vmem:[#allocation2 + $0x80] sm:$0xff] }
 0x299   :  { %v1239_v59 = vpop.eup %1238 }
 0x29a   :  { %v1697_v60 = vadd.f32 %v569_v37, %v568_v55  ;;  %v563_v61 = vmul.f32 0.5, %v1239_v59 }
 0x29c   :  { %1240 = vtanh.f32 %v1697_v60  ;;  %v566_v49 = vadd.f32 0.5, %v563_v61 }
 0x2a2   :  { %v1241_v63 = vpop.eup %1240 }
 0x2a3   :  { %v572_v0 = vmul.f32 %v1241_v63, %v566_v49 }
 0x2a5   :  { %v577_v1 = vpack.c.bf16 %v572_v0, %v572_v0 }
 0x2a7   :  { %586 = vmatmul.bf16.vlgmr.msra.gmra.mxu0 %v577_v1  ;;  %599 = vmatmul.bf16.vlgmr.msra.gmra.mxu1 %v577_v1 }
 0x2a8   :  { %612 = vmatmul.bf16.vlgmr.msra.gmra.mxu2 %v577_v1  ;;  %625 = vmatmul.bf16.vlgmr.msra.gmra.mxu3 %v577_v1 }
 0x2a9   :  { %736 = vmatpush.bf16.msra.mxu0 %v1429_v3  ;;  %749 = vmatpush.bf16.msra.mxu1 %v1431_v7 }
 0x2aa   :  { %762 = vmatpush.bf16.msra.mxu2 %v1433_v8  ;;  %775 = vmatpush.bf16.msra.mxu3 %v1436_v12 }
 0x2ad   :  { %737 = vmatpush.bf16.msra.mxu0 %v1440_v16  ;;  %750 = vmatpush.bf16.msra.mxu1 %v1442_v17 }
 0x2ae   :  { %763 = vmatpush.bf16.msra.mxu2 %v1445_v21  ;;  %776 = vmatpush.bf16.msra.mxu3 %v1447_v25 }
 0x2b1   :  { %738 = vmatpush.bf16.msra.mxu0 %v1450_v29  ;;  %751 = vmatpush.bf16.msra.mxu1 %v1454_v33 }
 0x2b2   :  { %764 = vmatpush.bf16.msra.mxu2 %v1456_v34  ;;  %777 = vmatpush.bf16.msra.mxu3 %v1459_v38 }
 0x2b5   :  { %739 = vmatpush.bf16.msra.mxu0 %v1462_v44  ;;  %752 = vmatpush.bf16.msra.mxu1 %v1466_v45 }
 0x2b6   :  { %765 = vmatpush.bf16.msra.mxu2 %v1468_v46  ;;  %778 = vmatpush.bf16.msra.mxu3 %v1471_v50 }
 0x2b9   :  { %740 = vmatpush.bf16.msra.mxu0 %v1474_v56  ;;  %753 = vmatpush.bf16.msra.mxu1 %v1478_v57 }
 0x2ba   :  { %766 = vmatpush.bf16.msra.mxu2 %v1480_v58  ;;  %779 = vmatpush.bf16.msra.mxu3 %v1483_v62 }
 0x2bd   :  { %741 = vmatpush.bf16.msra.mxu0 %v1486_v5  ;;  %754 = vmatpush.bf16.msra.mxu1 %v1490_v9 }
 0x2be   :  { %767 = vmatpush.bf16.msra.mxu2 %v1492_v10  ;;  %780 = vmatpush.bf16.msra.mxu3 %v1495_v15 }
 0x2c1   :  { %742 = vmatpush.bf16.msra.mxu0 %v1498_v23  ;;  %755 = vmatpush.bf16.msra.mxu1 %v1502_v24 }
 0x2c2   :  { %768 = vmatpush.bf16.msra.mxu2 %v1504_v26  ;;  %781 = vmatpush.bf16.msra.mxu3 %v1507_v31 }
 0x2c5   :  { %743 = vmatpush.bf16.msra.mxu0 %v1510_v40  ;;  %756 = vmatpush.bf16.msra.mxu1 %v1514_v41 }
 0x2c6   :  { %769 = vmatpush.bf16.msra.mxu2 %v1516_v42  ;;  %782 = vmatpush.bf16.msra.mxu3 %v1519_v43 }
 0x324   :  { %v587_v4 = vpop.f32.mrf.mxu0  ;;  %v600_v6 = vpop.f32.mrf.mxu1 }
 0x325   :  { %v630_v11 = vadd.f32 %v587_v4, %v573_v54  ;;  %v631_v13 = vadd.f32 %v600_v6, %v574_v2 }
 0x327   :  { %v634_v14 = vmul.f32 0.5, %v630_v11  ;;  %v635_v18 = vmul.f32 0.5, %v631_v13 }
 0x329   :  { %1242 = vtanh.f32 %v634_v14  ;;  %v731_v14 = vld [vmem:[#allocation2 + $0xc0] sm:$0xff] }
 0x32a   :  { %1244 = vtanh.f32 %v635_v18  ;;  %v732_v18 = vld [vmem:[#allocation2 + $0xc8] sm:$0xff] }
 0x32b   :  { %v613_v22 = vpop.f32.mrf.mxu2  ;;  %v626_v27 = vpop.f32.mrf.mxu3 }
 0x32c   :  { %v632_v28 = vadd.f32 %v613_v22, %v575_v19  ;;  %v633_v30 = vadd.f32 %v626_v27, %v576_v20  ;;  %v589_v32 = vpop.f32.mrf.mxu0  ;;  %v602_v35 = vpop.f32.mrf.mxu1 }
 0x32d   :  { %v733_v32 = vld [vmem:[#allocation2 + $0xd0] sm:$0xff]  ;;  %v734_v35 = vld [vmem:[#allocation2 + $0xd8] sm:$0xff] }
 0x32e   :  { %v636_v36 = vmul.f32 0.5, %v632_v28  ;;  %1246 = vtanh.f32 %v633_v30 }
 0x32f   :  { %v1243_v39 = vpop.eup %1242 }
 0x330   :  { %v1245_v47 = vpop.eup %1244  ;;  %v640_v48 = vmul.f32 0.5, %v1243_v39  ;;  %1248 = vtanh.f32 %v636_v36 }
 0x331   :  { %v641_v51 = vmul.f32 0.5, %v1245_v47 }
 0x332   :  { %v643_v52 = vadd.f32 0.5, %v640_v48 }
 0x333   :  { %v644_v53 = vadd.f32 0.5, %v641_v51  ;;  %v615_v55 = vpop.f32.mrf.mxu2  ;;  %v628_v37 = vpop.f32.mrf.mxu3 }
 0x334   :  { %v1247_v59 = vpop.eup %1246 }
 0x335   :  { %v647_v61 = vmul.f32 %v644_v53, %v1697_v60  ;;  %v648_v49 = vmul.f32 %v1247_v59, %v643_v52 }
 0x336   :  { %v1249_v63 = vpop.eup %1248 }
 0x337   :  { %v1733_v0 = vadd.f32 %v648_v49, %v647_v61  ;;  %v642_v1 = vmul.f32 0.5, %v1249_v63 }
 0x339   :  { %1250 = vtanh.f32 %v1733_v0  ;;  %v645_v54 = vadd.f32 0.5, %v642_v1 }
 0x33f   :  { %v1251_v2 = vpop.eup %1250 }
 0x340   :  { %v651_v4 = vmul.f32 %v1251_v2, %v645_v54 }
 0x342   :  { %v656_v6 = vpack.c.bf16 %v651_v4, %v651_v4 }
 0x344   :  { %665 = vmatmul.bf16.vlgmr.msrb.gmra.mxu0 %v656_v6  ;;  %678 = vmatmul.bf16.vlgmr.msrb.gmra.mxu1 %v656_v6 }
 0x345   :  { %691 = vmatmul.bf16.vlgmr.msrb.gmra.mxu2 %v656_v6  ;;  %704 = vmatmul.bf16.vlgmr.msrb.gmra.mxu3 %v656_v6 }
 0x346   :  { %815 = vmatpush.bf16.msrb.mxu0 %v1429_v3  ;;  %828 = vmatpush.bf16.msrb.mxu1 %v1431_v7  ;;  %v652_v3 = vld [vmem:[#allocation2 + $0xa0] sm:$0xff]  ;;  %v653_v7 = vld [vmem:[#allocation2 + $0xa8] sm:$0xff] }
 0x347   :  { %841 = vmatpush.bf16.msrb.mxu2 %v1433_v8  ;;  %854 = vmatpush.bf16.msrb.mxu3 %v1436_v12 }
 0x34a   :  { %816 = vmatpush.bf16.msrb.mxu0 %v1440_v16  ;;  %829 = vmatpush.bf16.msrb.mxu1 %v1442_v17 }
 0x34b   :  { %842 = vmatpush.bf16.msrb.mxu2 %v1445_v21  ;;  %855 = vmatpush.bf16.msrb.mxu3 %v1447_v25 }
 0x34e   :  { %817 = vmatpush.bf16.msrb.mxu0 %v1450_v29  ;;  %830 = vmatpush.bf16.msrb.mxu1 %v1454_v33  ;;  %v654_v29 = vld [vmem:[#allocation2 + $0xb0] sm:$0xff]  ;;  %v655_v33 = vld [vmem:[#allocation2 + $0xb8] sm:$0xff] }
 0x34f   :  { %843 = vmatpush.bf16.msrb.mxu2 %v1456_v34  ;;  %856 = vmatpush.bf16.msrb.mxu3 %v1459_v38 }
 0x352   :  { %818 = vmatpush.bf16.msrb.mxu0 %v1462_v44  ;;  %831 = vmatpush.bf16.msrb.mxu1 %v1466_v45 }
 0x353   :  { %844 = vmatpush.bf16.msrb.mxu2 %v1468_v46  ;;  %857 = vmatpush.bf16.msrb.mxu3 %v1471_v50 }
 0x356   :  { %819 = vmatpush.bf16.msrb.mxu0 %v1474_v56  ;;  %832 = vmatpush.bf16.msrb.mxu1 %v1478_v57 }
 0x357   :  { %845 = vmatpush.bf16.msrb.mxu2 %v1480_v58  ;;  %858 = vmatpush.bf16.msrb.mxu3 %v1483_v62 }
 0x35a   :  { %820 = vmatpush.bf16.msrb.mxu0 %v1486_v5  ;;  %833 = vmatpush.bf16.msrb.mxu1 %v1490_v9 }
 0x35b   :  { %846 = vmatpush.bf16.msrb.mxu2 %v1492_v10  ;;  %859 = vmatpush.bf16.msrb.mxu3 %v1495_v15 }
 0x35e   :  { %821 = vmatpush.bf16.msrb.mxu0 %v1498_v23  ;;  %834 = vmatpush.bf16.msrb.mxu1 %v1502_v24 }
 0x35f   :  { %847 = vmatpush.bf16.msrb.mxu2 %v1504_v26  ;;  %860 = vmatpush.bf16.msrb.mxu3 %v1507_v31 }
 0x362   :  { %822 = vmatpush.bf16.msrb.mxu0 %v1510_v40  ;;  %835 = vmatpush.bf16.msrb.mxu1 %v1514_v41 }
 0x363   :  { %848 = vmatpush.bf16.msrb.mxu2 %v1516_v42  ;;  %861 = vmatpush.bf16.msrb.mxu3 %v1519_v43 }
 0x3c1   :  { %v666_v8 = vpop.f32.mrf.mxu0  ;;  %v679_v12 = vpop.f32.mrf.mxu1 }
 0x3c2   :  { %v709_v16 = vadd.f32 %v666_v8, %v652_v3  ;;  %v710_v17 = vadd.f32 %v679_v12, %v653_v7 }
 0x3c4   :  { %v713_v21 = vmul.f32 0.5, %v709_v16  ;;  %v714_v25 = vmul.f32 0.5, %v710_v17 }
 0x3c6   :  { %1252 = vtanh.f32 %v713_v21  ;;  %v1189_v21 = vld [vmem:[#allocation7 + $0x38] sm:$0xff] }
 0x3c7   :  { %1254 = vtanh.f32 %v714_v25  ;;  %v1188_v25 = vld [vmem:[#allocation7 + $0x30] sm:$0xff] }
 0x3c8   :  { %v692_v34 = vpop.f32.mrf.mxu2  ;;  %v705_v38 = vpop.f32.mrf.mxu3 }
 0x3c9   :  { %v711_v44 = vadd.f32 %v692_v34, %v654_v29  ;;  %v712_v45 = vadd.f32 %v705_v38, %v655_v33  ;;  %v668_v46 = vpop.f32.mrf.mxu0  ;;  %v681_v50 = vpop.f32.mrf.mxu1  ;;  %v1187_v29 = vld [vmem:[#allocation7 + $0x28] sm:$0xff]  ;;  %v1186_v33 = vld [vmem:[#allocation7 + $0x20] sm:$0xff]  ;;  %v1185_v34 = vld [vmem:[#allocation7 + $0x18] sm:$0xff] }
 0x3ca   :  { %v1184_v38 = vld [vmem:[#allocation7 + $0x10] sm:$0xff]  ;;  %v810_v46 = vld [vmem:[#allocation2 + $0xe0] sm:$0xff]  ;;  %v811_v50 = vld [vmem:[#allocation2 + $0xe8] sm:$0xff] }
 0x3cb   :  { %v715_v56 = vmul.f32 0.5, %v711_v44  ;;  %1256 = vtanh.f32 %v712_v45  ;;  %v1183_v44 = vld [vmem:[#allocation7 + $0x8] sm:$0xff]  ;;  %v1182_v45 = vld [vmem:[#allocation7] sm:$0xff] }
 0x3cc   :  { %v1253_v57 = vpop.eup %1252 }
 0x3cd   :  { %v1255_v58 = vpop.eup %1254  ;;  %v719_v62 = vmul.f32 0.5, %v1253_v57  ;;  %1258 = vtanh.f32 %v715_v56 }
 0x3ce   :  { %v720_v5 = vmul.f32 0.5, %v1255_v58 }
 0x3cf   :  { %v722_v9 = vadd.f32 0.5, %v719_v62 }
 0x3d0   :  { %v723_v10 = vadd.f32 0.5, %v720_v5  ;;  %v694_v15 = vpop.f32.mrf.mxu2  ;;  %v707_v23 = vpop.f32.mrf.mxu3 }
 0x3d1   :  { %v1257_v24 = vpop.eup %1256  ;;  %v813_v15 = vld [vmem:[#allocation2 + $0xf8] sm:$0xff] }
 0x3d2   :  { %v726_v26 = vmul.f32 %v723_v10, %v1733_v0  ;;  %v727_v31 = vmul.f32 %v1257_v24, %v722_v9  ;;  %v812_v10 = vld [vmem:[#allocation2 + $0xf0] sm:$0xff] }
 0x3d3   :  { %v1259_v40 = vpop.eup %1258 }
 0x3d4   :  { %v728_v41 = vadd.f32 %v727_v31, %v726_v26  ;;  %v721_v42 = vmul.f32 0.5, %v1259_v40 }
 0x3d6   :  { %1260 = vtanh.f32 %v728_v41  ;;  %v724_v43 = vadd.f32 0.5, %v721_v42 }
 0x3dc   :  { %v1261_v60 = vpop.eup %1260 }
 0x3dd   :  { %v730_v11 = vmul.f32 %v1261_v60, %v724_v43 }
 0x3df   :  { %v735_v13 = vpack.c.bf16 %v730_v11, %v730_v11 }
 0x3e1   :  { %744 = vmatmul.bf16.vlgmr.msra.gmra.mxu0 %v735_v13  ;;  %757 = vmatmul.bf16.vlgmr.msra.gmra.mxu1 %v735_v13 }
 0x3e2   :  { %770 = vmatmul.bf16.vlgmr.msra.gmra.mxu2 %v735_v13  ;;  %783 = vmatmul.bf16.vlgmr.msra.gmra.mxu3 %v735_v13 }
 0x3e3   :  { %958 = vmatpush.bf16.msra.mxu0 %v1189_v21 }
 0x3e7   :  { %959 = vmatpush.bf16.msra.mxu0 %v1188_v25 }
 0x3eb   :  { %960 = vmatpush.bf16.msra.mxu0 %v1187_v29 }
 0x3ef   :  { %961 = vmatpush.bf16.msra.mxu0 %v1186_v33 }
 0x3f3   :  { %962 = vmatpush.bf16.msra.mxu0 %v1185_v34 }
 0x3f7   :  { %963 = vmatpush.bf16.msra.mxu0 %v1184_v38 }
 0x3fb   :  { %964 = vmatpush.bf16.msra.mxu0 %v1183_v44 }
 0x3ff   :  { %965 = vmatpush.bf16.msra.mxu0 %v1182_v45 }
 0x45e   :  { %v745_v19 = vpop.f32.mrf.mxu0  ;;  %v758_v20 = vpop.f32.mrf.mxu1 }
 0x45f   :  { %v788_v22 = vadd.f32 %v745_v19, %v731_v14  ;;  %v789_v27 = vadd.f32 %v758_v20, %v732_v18 }
 0x461   :  { %v792_v28 = vmul.f32 0.5, %v788_v22  ;;  %v793_v30 = vmul.f32 0.5, %v789_v27 }
 0x463   :  { %1262 = vtanh.f32 %v792_v28 }
 0x464   :  { %1264 = vtanh.f32 %v793_v30 }
 0x465   :  { %v771_v36 = vpop.f32.mrf.mxu2  ;;  %v784_v39 = vpop.f32.mrf.mxu3 }
 0x466   :  { %v790_v47 = vadd.f32 %v771_v36, %v733_v32  ;;  %v791_v48 = vadd.f32 %v784_v39, %v734_v35  ;;  %v747_v51 = vpop.f32.mrf.mxu0  ;;  %v760_v52 = vpop.f32.mrf.mxu1 }
 0x467   :  { %v1201_v51 = vld [vmem:[%s1778_s3] ss:$0 sm:$0xff] }
 0x468   :  { %v794_v53 = vmul.f32 0.5, %v790_v47  ;;  %1266 = vtanh.f32 %v791_v48 }
 0x469   :  { %v1263_v55 = vpop.eup %1262 }
 0x46a   :  { %v1265_v37 = vpop.eup %1264  ;;  %v798_v59 = vmul.f32 0.5, %v1263_v55  ;;  %1268 = vtanh.f32 %v794_v53 }
 0x46b   :  { %v799_v61 = vmul.f32 0.5, %v1265_v37 }
 0x46c   :  { %v801_v49 = vadd.f32 0.5, %v798_v59 }
 0x46d   :  { %v802_v63 = vadd.f32 0.5, %v799_v61  ;;  %v773_v0 = vpop.f32.mrf.mxu2  ;;  %v786_v1 = vpop.f32.mrf.mxu3 }
 0x46e   :  { %v1267_v54 = vpop.eup %1266 }
 0x46f   :  { %v805_v2 = vmul.f32 %v802_v63, %v728_v41  ;;  %v806_v4 = vmul.f32 %v1267_v54, %v801_v49 }
 0x470   :  { %v1269_v6 = vpop.eup %1268 }
 0x471   :  { %v807_v3 = vadd.f32 %v806_v4, %v805_v2  ;;  %v800_v7 = vmul.f32 0.5, %v1269_v6 }
 0x473   :  { %1270 = vtanh.f32 %v807_v3  ;;  %v803_v8 = vadd.f32 0.5, %v800_v7 }
 0x479   :  { %v1271_v12 = vpop.eup %1270 }
 0x47a   :  { %v809_v16 = vmul.f32 %v1271_v12, %v803_v8 }
 0x47c   :  { %v814_v17 = vpack.c.bf16 %v809_v16, %v809_v16 }
 0x47e   :  { %823 = vmatmul.bf16.vlgmr.msrb.gmra.mxu0 %v814_v17  ;;  %836 = vmatmul.bf16.vlgmr.msrb.gmra.mxu1 %v814_v17 }
 0x47f   :  { %849 = vmatmul.bf16.vlgmr.msrb.gmra.mxu2 %v814_v17  ;;  %862 = vmatmul.bf16.vlgmr.msrb.gmra.mxu3 %v814_v17 }
 0x4fb   :  { %v824_v56 = vpop.f32.mrf.mxu0  ;;  %v837_v57 = vpop.f32.mrf.mxu1 }
 0x4fc   :  { %v867_v58 = vadd.f32 %v824_v56, %v810_v46  ;;  %v868_v62 = vadd.f32 %v837_v57, %v811_v50 }
 0x4fe   :  { %v871_v5 = vmul.f32 0.5, %v867_v58  ;;  %v872_v9 = vmul.f32 0.5, %v868_v62 }
 0x500   :  { %1272 = vtanh.f32 %v871_v5 }
 0x501   :  { %1274 = vtanh.f32 %v872_v9 }
 0x502   :  { %v850_v23 = vpop.f32.mrf.mxu2  ;;  %v863_v24 = vpop.f32.mrf.mxu3 }
 0x503   :  { %v869_v26 = vadd.f32 %v850_v23, %v812_v10  ;;  %v870_v31 = vadd.f32 %v863_v24, %v813_v15  ;;  %v826_v40 = vpop.f32.mrf.mxu0  ;;  %v839_v41 = vpop.f32.mrf.mxu1 }
 0x505   :  { %v873_v42 = vmul.f32 0.5, %v869_v26  ;;  %1276 = vtanh.f32 %v870_v31 }
 0x506   :  { %v1273_v43 = vpop.eup %1272 }
 0x507   :  { %v1275_v60 = vpop.eup %1274  ;;  %v877_v11 = vmul.f32 0.5, %v1273_v43  ;;  %1278 = vtanh.f32 %v873_v42 }
 0x508   :  { %v878_v13 = vmul.f32 0.5, %v1275_v60 }
 0x509   :  { %v880_v14 = vadd.f32 0.5, %v877_v11 }
 0x50a   :  { %v881_v18 = vadd.f32 0.5, %v878_v13  ;;  %v852_v19 = vpop.f32.mrf.mxu2  ;;  %v865_v20 = vpop.f32.mrf.mxu3 }
 0x50b   :  { %v1277_v22 = vpop.eup %1276 }
 0x50c   :  { %v884_v27 = vmul.f32 %v881_v18, %v807_v3  ;;  %v885_v28 = vmul.f32 %v1277_v22, %v880_v14 }
 0x50d   :  { %v1279_v30 = vpop.eup %1278 }
 0x50e   :  { %v886_v32 = vadd.f32 %v885_v28, %v884_v27  ;;  %v879_v35 = vmul.f32 0.5, %v1279_v30 }
 0x510   :  { %1280 = vtanh.f32 %v886_v32  ;;  %v882_v36 = vadd.f32 0.5, %v879_v35 }
 0x516   :  { %v1281_v39 = vpop.eup %1280 }
 0x517   :  { %v888_v47 = vmul.f32 %v1281_v39, %v882_v36 }
 0x519   :  { %v889_v48 = vpack.c.bf16 %v888_v47, %v888_v47 }
 0x51b   :  { %966 = vmatmul.bf16.vlgmr.msra.gmra.mxu0 %v889_v48 }
 0x598   :  { %v967_v52 = vpop.f32.mrf.mxu0 }
 0x599   :  { %v968_v53 = vadd.f32 %v1201_v51, %v967_v52 }
 0x59b   :  { %971 = vst [vmem:[#allocation8] sm:$0xff] %v968_v53 }
 0x59c   :  { %982 = dma.vmem_to_hbm [thread:$0]  %s978_s10, 128, %s980_s13, [#allocation4]  }
 0x5a0   :  { %v969_v55 = vpop.f32.mrf.mxu0 }
 0x5a1   :  { %1382 = dma.done.wait [#allocation4], 128  }
 0x5a2   :  { %1383 = vsyncadd [#allocation4], 4294967168 }
 0x5a3   :  { %987 = vsyncpa [#allocation3], 1 }
 0x5a4   :  { %988 = vsyncpa [#allocation6], 1 }
 0x5a5   :  { %989 = vsyncpa [#allocation4], 1 }

</bundles_post_ra>
